<compile_context>
chip_gen: v6e
topology: v6e:2x2x1
jax: 0.10.0
libtpu: 0.0.40
codegen_flags: <defaults>
</compile_context>

<pallas_src>
import math
import functools

import jax
import jax.numpy as jnp
from jax import lax
from jax.experimental import pallas as pl
from jax.experimental.pallas import tpu as pltpu


def _cross_attn_kernel(rgb_ref, depth_ref, w_ref, aux_ref, out_ref,
                       *, num_heads, head_dim, eps):
    Bb, N, D = rgb_ref.shape
    _, M, _ = depth_ref.shape
    H, hd = num_heads, head_dim
    dt = rgb_ref.dtype                        # native MXU input dtype (bf16/f32)

    # Collapse the folded batch into rows for the projections.
    x = rgb_ref[...].reshape(Bb * N, D)       # (Rn, D), input dtype
    y = depth_ref[...].reshape(Bb * M, D)     # (Rm, D), input dtype

    # Packed biases / LayerNorm params: rows 0..5 of a single (8, D) block.
    aux = aux_ref[...].astype(jnp.float32)
    bq, bk, bv, bo = aux[0:1], aux[1:2], aux[2:3], aux[3:4]
    gamma, beta = aux[4:5], aux[5:6]

    # --- Q/K/V projections: native-dtype MXU inputs, f32 accumulation ---
    q = jnp.dot(x, w_ref[0], preferred_element_type=jnp.float32) + bq
    k = jnp.dot(y, w_ref[1], preferred_element_type=jnp.float32) + bk
    v = jnp.dot(y, w_ref[2], preferred_element_type=jnp.float32) + bv

    # Fold the 1/sqrt(hd) attention scale into Q (smaller than scaling scores).
    q = q * (1.0 / math.sqrt(hd))

    # (rows, D) -> (Bb*H, seq, hd): single leading batch dim, head_dim stays
    # the contiguous lane / contraction axis for the MXU.
    qh = jnp.transpose(q.reshape(Bb, N, H, hd), (0, 2, 1, 3)) \
            .reshape(Bb * H, N, hd).astype(dt)
    kh = jnp.transpose(k.reshape(Bb, M, H, hd), (0, 2, 1, 3)) \
            .reshape(Bb * H, M, hd).astype(dt)
    vh = jnp.transpose(v.reshape(Bb, M, H, hd), (0, 2, 1, 3)) \
            .reshape(Bb * H, M, hd).astype(dt)

    # --- scaled dot-product attention, batched over Bb*H ---
    scores = jnp.einsum('bqd,bkd->bqk', qh, kh,
                        preferred_element_type=jnp.float32)        # (Bb*H, N, M)
    smax = jnp.max(scores, axis=-1, keepdims=True)
    p = jnp.exp(scores - smax)
    denom = jnp.sum(p, axis=-1, keepdims=True)                     # (Bb*H, N, 1)
    attn = p * (1.0 / denom)                                       # exact recip on tiny tensor
    # TODO(synk): nn.Dropout is identity here (p=0.0 / eval mode); no train-mode RNG.

    ctx = jnp.einsum('bqk,bkd->bqd', attn.astype(dt), vh,
                     preferred_element_type=jnp.float32)           # (Bb*H, N, hd)
    ctx = jnp.transpose(ctx.reshape(Bb, H, N, hd), (0, 2, 1, 3)) \
             .reshape(Bb * N, D)

    # --- output projection + residual + LayerNorm (f32 math) ---
    out = jnp.dot(ctx.astype(dt), w_ref[3],
                  preferred_element_type=jnp.float32) + bo
    res = out + x.astype(jnp.float32)
    mean = jnp.mean(res, axis=-1, keepdims=True)
    cent = res - mean
    var = jnp.mean(cent * cent, axis=-1, keepdims=True)
    normed = cent * lax.rsqrt(var + eps)
    result = normed * gamma + beta

    out_ref[...] = result.reshape(Bb, N, D).astype(out_ref.dtype)


def _choose_block_b(B, N, M, D):
    """Largest batch fold that keeps >= 2 grid steps (megacore sharding) and a
    modest per-step activation footprint."""
    if B <= 1:
        return 1
    budget = 8 * 1024 * 1024        # rough f32 activation budget per step
    best = 1
    for bb in range(1, B // 2 + 1):
        if B % bb != 0:
            continue
        approx_bytes = bb * (N + M) * D * 4 * 6   # q/k/v/ctx/out + slack
        if approx_bytes <= budget:
            best = bb
    return best


def cross_attention_lora(rgb, depth, params, *, num_heads, eps=1e-5):
    B, N, D = rgb.shape
    _, M, _ = depth.shape
    assert D % num_heads == 0
    head_dim = D // num_heads
    dt = rgb.dtype

    # Stack the four projection weights (pre-transposed to (D_in, D_out)) into
    # one (4, D, D) block: single resident VMEM buffer, one DMA.  For bf16
    # inputs the weights are held in bf16 (v7x VMEM is only 64 MiB).
    w_stack = jnp.stack([params['wq'].T, params['wk'].T,
                         params['wv'].T, params['wo'].T]).astype(dt)
    # Pack biases + LayerNorm params into a single sublane-aligned (8, D) f32
    # block instead of six padded (1, D) tiles.
    aux = jnp.concatenate(
        [jnp.stack([params['bq'], params['bk'], params['bv'], params['bo'],
                    params['gamma'], params['beta']]).astype(jnp.float32),
         jnp.zeros((2, D), jnp.float32)], axis=0)

    bb = _choose_block_b(B, N, M, D)
    grid = (B // bb,)

    kernel = functools.partial(_cross_attn_kernel, num_heads=num_heads,
                               head_dim=head_dim, eps=eps)

    itemsize = jnp.dtype(dt).itemsize
    flops = 2 * B * D * D * (2 * N + 2 * M) + 4 * B * N * M * D
    transcendentals = B * num_heads * N * M + B * N
    bytes_accessed = ((2 * B * N * D + B * M * D + 4 * D * D) * itemsize
                      + 8 * D * 4)

    return pl.pallas_call(
        kernel,
        out_shape=jax.ShapeDtypeStruct((B, N, D), dt),
        grid_spec=pltpu.PrefetchScalarGridSpec(
            num_scalar_prefetch=0,
            grid=grid,
            in_specs=[
                pl.BlockSpec((bb, N, D), lambda b: (b, 0, 0)),   # rgb
                pl.BlockSpec((bb, M, D), lambda b: (b, 0, 0)),   # depth
                pl.BlockSpec((4, D, D), lambda b: (0, 0, 0)),    # wq/wk/wv/wo
                pl.BlockSpec((8, D), lambda b: (0, 0)),          # biases + LN
            ],
            out_specs=pl.BlockSpec((bb, N, D), lambda b: (b, 0, 0)),
        ),
        compiler_params=pltpu.CompilerParams(
            dimension_semantics=("parallel",),
            vmem_limit_bytes=48 * 1024 * 1024,
        ),
        cost_estimate=pl.CostEstimate(
            flops=flops,
            transcendentals=transcendentals,
            bytes_accessed=bytes_accessed),
    )(rgb, depth, w_stack, aux)


def _reference(rgb, depth, params, *, num_heads, eps=1e-5):
    """Pure-JAX reference mirroring the PyTorch forward."""
    B, N, D = rgb.shape
    _, M, _ = depth.shape
    hd = D // num_heads
    q = rgb @ params['wq'].T + params['bq']
    k = depth @ params['wk'].T + params['bk']
    v = depth @ params['wv'].T + params['bv']
    q = q.reshape(B, N, num_heads, hd).transpose(0, 2, 1, 3)
    k = k.reshape(B, M, num_heads, hd).transpose(0, 2, 1, 3)
    v = v.reshape(B, M, num_heads, hd).transpose(0, 2, 1, 3)
    scores = (q @ jnp.swapaxes(k, -2, -1)) / math.sqrt(hd)
    attn = jax.nn.softmax(scores, axis=-1)
    out = attn @ v
    out = out.transpose(0, 2, 1, 3).reshape(B, N, D)
    out = out @ params['wo'].T + params['bo']
    res = out + rgb
    mean = res.mean(-1, keepdims=True)
    var = ((res - mean) ** 2).mean(-1, keepdims=True)
    return (res - mean) / jnp.sqrt(var + eps) * params['gamma'] + params['beta']


if __name__ == "__main__":
    # Small but TPU-friendly shapes consistent with the module: embed_dim=256
    # with num_heads=2 keeps head_dim=128 (same head_dim as the default
    # embed_dim=1024 / num_heads=8 module), so every matmul and the output
    # store are lane-dense.  B=4 folds to 2 batch elements per grid step while
    # keeping 2 parallel grid steps for megacore sharding.
    B, N, M, D, H = 4, 16, 8, 256, 2

    key = jax.random.PRNGKey(0)
    keys = jax.random.split(key, 10)
    scale = 1.0 / math.sqrt(D)
    params = {
        'wq': jax.random.normal(keys[0], (D, D), jnp.float32) * scale,
        'bq': jax.random.normal(keys[1], (D,), jnp.float32) * 0.01,
        'wk': jax.random.normal(keys[2], (D, D), jnp.float32) * scale,
        'bk': jax.random.normal(keys[3], (D,), jnp.float32) * 0.01,
        'wv': jax.random.normal(keys[4], (D, D), jnp.float32) * scale,
        'bv': jax.random.normal(keys[5], (D,), jnp.float32) * 0.01,
        'wo': jax.random.normal(keys[6], (D, D), jnp.float32) * scale,
        'bo': jax.random.normal(keys[7], (D,), jnp.float32) * 0.01,
        'gamma': jnp.ones((D,), jnp.float32),
        'beta': jnp.zeros((D,), jnp.float32),
    }
    rgb = jax.random.normal(keys[8], (B, N, D), jnp.float32)
    depth = jax.random.normal(keys[9], (B, M, D), jnp.float32)

    out = jax.block_until_ready(
        cross_attention_lora(rgb, depth, params, num_heads=H))

    ref = _reference(rgb, depth, params, num_heads=H)
    assert out.shape == (B, N, D)
    max_err = float(jnp.max(jnp.abs(out - ref)))
    assert jnp.allclose(out, ref, atol=2e-3, rtol=2e-3), \
        f"mismatch vs reference (max abs err {max_err})"
    print("KERNEL_OK")
</pallas_src>

<mosaic_0001>
module attributes {stable_mosaic.version = 11 : i64} {
  func.func @_cross_attn_kernel(%arg0: i32, %arg1: memref<2x16x256xf32, #tpu.memory_space<vmem>>, %arg2: memref<2x8x256xf32, #tpu.memory_space<vmem>>, %arg3: memref<4x256x256xf32, #tpu.memory_space<vmem>>, %arg4: memref<8x256xf32, #tpu.memory_space<vmem>>, %arg5: memref<2x16x256xf32, #tpu.memory_space<vmem>>) attributes {dimension_semantics = [#tpu.dimension_semantics<parallel>], iteration_bounds = array<i64: 2>, scalar_prefetch = 0 : i64, scratch_operands = 0 : i64, tpu.core_type = #tpu.core_type<tc>, window_params = [{transform_indices = @transform_0, window_bounds = array<i64: 2, 16, 256>}, {transform_indices = @transform_1, window_bounds = array<i64: 2, 8, 256>}, {pipeline_mode = #tpu.pipeline_mode<synchronous>, transform_indices = @transform_2, window_bounds = array<i64: 4, 256, 256>}, {pipeline_mode = #tpu.pipeline_mode<synchronous>, transform_indices = @transform_3, window_bounds = array<i64: 8, 256>}, {transform_indices = @transform_4, window_bounds = array<i64: 2, 16, 256>}]} {
    %c0 = arith.constant 0 : index
    %c0_0 = arith.constant 0 : index
    %c0_1 = arith.constant 0 : index
    %0 = vector.load %arg1[%c0, %c0_0, %c0_1] : memref<2x16x256xf32, #tpu.memory_space<vmem>>, vector<2x16x256xf32>
    %1 = vector.shape_cast %0 : vector<2x16x256xf32> to vector<32x256xf32>
    %c0_2 = arith.constant 0 : index
    %c0_3 = arith.constant 0 : index
    %c0_4 = arith.constant 0 : index
    %2 = vector.load %arg2[%c0_2, %c0_3, %c0_4] : memref<2x8x256xf32, #tpu.memory_space<vmem>>, vector<2x8x256xf32>
    %3 = vector.shape_cast %2 : vector<2x8x256xf32> to vector<16x256xf32>
    %c0_5 = arith.constant 0 : index
    %c0_6 = arith.constant 0 : index
    %4 = vector.load %arg4[%c0_5, %c0_6] : memref<8x256xf32, #tpu.memory_space<vmem>>, vector<8x256xf32>
    %5 = vector.extract_strided_slice %4 {offsets = [0, 0], sizes = [1, 256], strides = [1, 1]} : vector<8x256xf32> to vector<1x256xf32>
    %6 = vector.extract_strided_slice %4 {offsets = [1, 0], sizes = [1, 256], strides = [1, 1]} : vector<8x256xf32> to vector<1x256xf32>
    %7 = vector.extract_strided_slice %4 {offsets = [2, 0], sizes = [1, 256], strides = [1, 1]} : vector<8x256xf32> to vector<1x256xf32>
    %8 = vector.extract_strided_slice %4 {offsets = [3, 0], sizes = [1, 256], strides = [1, 1]} : vector<8x256xf32> to vector<1x256xf32>
    %9 = vector.extract_strided_slice %4 {offsets = [4, 0], sizes = [1, 256], strides = [1, 1]} : vector<8x256xf32> to vector<1x256xf32>
    %10 = vector.extract_strided_slice %4 {offsets = [5, 0], sizes = [1, 256], strides = [1, 1]} : vector<8x256xf32> to vector<1x256xf32>
    %c0_7 = arith.constant 0 : index
    %c0_8 = arith.constant 0 : index
    %c0_9 = arith.constant 0 : index
    %11 = vector.load %arg3[%c0_7, %c0_8, %c0_9] : memref<4x256x256xf32, #tpu.memory_space<vmem>>, vector<1x256x256xf32>
    %12 = vector.shape_cast %11 : vector<1x256x256xf32> to vector<256x256xf32>
    %cst = arith.constant dense<0.000000e+00> : vector<32x256xf32>
    %13 = tpu.matmul %1, %12, %cst {dimension_numbers = #tpu.dot_dimension_numbers<[1], [0], [0], [1], [0, 0, 1, 1], [], []>} : vector<32x256xf32>, vector<256x256xf32>, vector<32x256xf32> -> vector<32x256xf32>
    %14 = vector.broadcast %5 : vector<1x256xf32> to vector<32x256xf32>
    %15 = arith.addf %13, %14 : vector<32x256xf32>
    %c1 = arith.constant 1 : index
    %c0_10 = arith.constant 0 : index
    %c0_11 = arith.constant 0 : index
    %16 = vector.load %arg3[%c1, %c0_10, %c0_11] : memref<4x256x256xf32, #tpu.memory_space<vmem>>, vector<1x256x256xf32>
    %17 = vector.shape_cast %16 : vector<1x256x256xf32> to vector<256x256xf32>
    %cst_12 = arith.constant dense<0.000000e+00> : vector<16x256xf32>
    %18 = tpu.matmul %3, %17, %cst_12 {dimension_numbers = #tpu.dot_dimension_numbers<[1], [0], [0], [1], [0, 0, 1, 1], [], []>} : vector<16x256xf32>, vector<256x256xf32>, vector<16x256xf32> -> vector<16x256xf32>
    %19 = vector.broadcast %6 : vector<1x256xf32> to vector<16x256xf32>
    %20 = arith.addf %18, %19 : vector<16x256xf32>
    %c2 = arith.constant 2 : index
    %c0_13 = arith.constant 0 : index
    %c0_14 = arith.constant 0 : index
    %21 = vector.load %arg3[%c2, %c0_13, %c0_14] : memref<4x256x256xf32, #tpu.memory_space<vmem>>, vector<1x256x256xf32>
    %22 = vector.shape_cast %21 : vector<1x256x256xf32> to vector<256x256xf32>
    %cst_15 = arith.constant dense<0.000000e+00> : vector<16x256xf32>
    %23 = tpu.matmul %3, %22, %cst_15 {dimension_numbers = #tpu.dot_dimension_numbers<[1], [0], [0], [1], [0, 0, 1, 1], [], []>} : vector<16x256xf32>, vector<256x256xf32>, vector<16x256xf32> -> vector<16x256xf32>
    %24 = vector.broadcast %7 : vector<1x256xf32> to vector<16x256xf32>
    %25 = arith.addf %23, %24 : vector<16x256xf32>
    %cst_16 = arith.constant 0.0883883461 : f32
    %26 = vector.broadcast %cst_16 : f32 to vector<32x256xf32>
    %27 = arith.mulf %15, %26 : vector<32x256xf32>
    %28 = vector.shape_cast %27 : vector<32x256xf32> to vector<2x16x2x128xf32>
    %29 = tpu.transpose %28, [0, 2, 1, 3] : vector<2x16x2x128xf32> -> vector<2x2x16x128xf32>
    %30 = vector.shape_cast %29 : vector<2x2x16x128xf32> to vector<4x16x128xf32>
    %31 = vector.shape_cast %20 : vector<16x256xf32> to vector<2x8x2x128xf32>
    %32 = tpu.transpose %31, [0, 2, 1, 3] : vector<2x8x2x128xf32> -> vector<2x2x8x128xf32>
    %33 = vector.shape_cast %32 : vector<2x2x8x128xf32> to vector<4x8x128xf32>
    %34 = vector.shape_cast %25 : vector<16x256xf32> to vector<2x8x2x128xf32>
    %35 = tpu.transpose %34, [0, 2, 1, 3] : vector<2x8x2x128xf32> -> vector<2x2x8x128xf32>
    %36 = vector.shape_cast %35 : vector<2x2x8x128xf32> to vector<4x8x128xf32>
    "tpu.trace_start"() <{level = 10 : i32, message = "bqd,bkd->bqk"}> : () -> ()
    %cst_17 = arith.constant dense<0.000000e+00> : vector<4x16x8xf32>
    %37 = tpu.matmul %30, %33, %cst_17 {dimension_numbers = #tpu.dot_dimension_numbers<[2], [2], [1], [1], [0, 0, 0, 1, 1, 1], [0], [0]>} : vector<4x16x128xf32>, vector<4x8x128xf32>, vector<4x16x8xf32> -> vector<4x16x8xf32>
    "tpu.trace_stop"() : () -> ()
    %cst_18 = arith.constant dense<0xFF800000> : vector<4x16xf32>
    %38 = vector.multi_reduction <maximumf>, %37, %cst_18 [2] : vector<4x16x8xf32> to vector<4x16xf32>
    %39 = vector.shape_cast %38 : vector<4x16xf32> to vector<4x16x1xf32>
    %40 = vector.broadcast %39 : vector<4x16x1xf32> to vector<4x16x8xf32>
    %41 = arith.subf %37, %40 : vector<4x16x8xf32>
    %42 = math.exp %41 : vector<4x16x8xf32>
    %cst_19 = arith.constant dense<0.000000e+00> : vector<4x16xf32>
    %43 = vector.multi_reduction <add>, %42, %cst_19 [2] : vector<4x16x8xf32> to vector<4x16xf32>
    %44 = vector.shape_cast %43 : vector<4x16xf32> to vector<4x16x1xf32>
    %cst_20 = arith.constant 1.000000e+00 : f32
    %45 = vector.broadcast %cst_20 : f32 to vector<4x16x1xf32>
    %46 = arith.divf %45, %44 : vector<4x16x1xf32>
    %47 = vector.broadcast %46 : vector<4x16x1xf32> to vector<4x16x8xf32>
    %48 = arith.mulf %42, %47 : vector<4x16x8xf32>
    "tpu.trace_start"() <{level = 10 : i32, message = "bqk,bkd->bqd"}> : () -> ()
    %cst_21 = arith.constant dense<0.000000e+00> : vector<4x16x128xf32>
    %49 = tpu.matmul %48, %36, %cst_21 {dimension_numbers = #tpu.dot_dimension_numbers<[2], [1], [1], [2], [0, 0, 0, 1, 1, 2], [0], [0]>} : vector<4x16x8xf32>, vector<4x8x128xf32>, vector<4x16x128xf32> -> vector<4x16x128xf32>
    "tpu.trace_stop"() : () -> ()
    %50 = vector.shape_cast %49 : vector<4x16x128xf32> to vector<2x2x16x128xf32>
    %51 = tpu.transpose %50, [0, 2, 1, 3] : vector<2x2x16x128xf32> -> vector<2x16x2x128xf32>
    %52 = vector.shape_cast %51 : vector<2x16x2x128xf32> to vector<32x256xf32>
    %c3 = arith.constant 3 : index
    %c0_22 = arith.constant 0 : index
    %c0_23 = arith.constant 0 : index
    %53 = vector.load %arg3[%c3, %c0_22, %c0_23] : memref<4x256x256xf32, #tpu.memory_space<vmem>>, vector<1x256x256xf32>
    %54 = vector.shape_cast %53 : vector<1x256x256xf32> to vector<256x256xf32>
    %cst_24 = arith.constant dense<0.000000e+00> : vector<32x256xf32>
    %55 = tpu.matmul %52, %54, %cst_24 {dimension_numbers = #tpu.dot_dimension_numbers<[1], [0], [0], [1], [0, 0, 1, 1], [], []>} : vector<32x256xf32>, vector<256x256xf32>, vector<32x256xf32> -> vector<32x256xf32>
    %56 = vector.broadcast %8 : vector<1x256xf32> to vector<32x256xf32>
    %57 = arith.addf %55, %56 : vector<32x256xf32>
    %58 = arith.addf %57, %1 : vector<32x256xf32>
    %cst_25 = arith.constant dense<0.000000e+00> : vector<32xf32>
    %59 = vector.multi_reduction <add>, %58, %cst_25 [1] : vector<32x256xf32> to vector<32xf32>
    %60 = vector.shape_cast %59 : vector<32xf32> to vector<32x1xf32>
    %cst_26 = arith.constant 2.560000e+02 : f32
    %61 = vector.broadcast %cst_26 : f32 to vector<32x1xf32>
    %62 = arith.divf %60, %61 : vector<32x1xf32>
    %63 = vector.broadcast %62 : vector<32x1xf32> to vector<32x256xf32>
    %64 = arith.subf %58, %63 : vector<32x256xf32>
    %65 = arith.mulf %64, %64 : vector<32x256xf32>
    %cst_27 = arith.constant dense<0.000000e+00> : vector<32xf32>
    %66 = vector.multi_reduction <add>, %65, %cst_27 [1] : vector<32x256xf32> to vector<32xf32>
    %67 = vector.shape_cast %66 : vector<32xf32> to vector<32x1xf32>
    %cst_28 = arith.constant 2.560000e+02 : f32
    %68 = vector.broadcast %cst_28 : f32 to vector<32x1xf32>
    %69 = arith.divf %67, %68 : vector<32x1xf32>
    %cst_29 = arith.constant 9.99999974E-6 : f32
    %70 = vector.broadcast %cst_29 : f32 to vector<32x1xf32>
    %71 = arith.addf %69, %70 : vector<32x1xf32>
    %72 = math.rsqrt %71 : vector<32x1xf32>
    %73 = vector.broadcast %72 : vector<32x1xf32> to vector<32x256xf32>
    %74 = arith.mulf %64, %73 : vector<32x256xf32>
    %75 = vector.broadcast %9 : vector<1x256xf32> to vector<32x256xf32>
    %76 = arith.mulf %74, %75 : vector<32x256xf32>
    %77 = vector.broadcast %10 : vector<1x256xf32> to vector<32x256xf32>
    %78 = arith.addf %76, %77 : vector<32x256xf32>
    %79 = vector.shape_cast %78 : vector<32x256xf32> to vector<2x16x256xf32>
    %c0_30 = arith.constant 0 : index
    %c0_31 = arith.constant 0 : index
    %c0_32 = arith.constant 0 : index
    %80 = vector.load %arg5[%c0_30, %c0_31, %c0_32] : memref<2x16x256xf32, #tpu.memory_space<vmem>>, vector<2x16x256xf32>
    tpu.vector_store %arg5[%c0_30, %c0_31, %c0_32], %79 {strides = array<i32>} : memref<2x16x256xf32, #tpu.memory_space<vmem>>, vector<2x16x256xf32>,
    return
  }
  func.func @transform_0(%arg0: i32) -> (i32, i32, i32) {
    %c0_i32 = arith.constant 0 : i32
    %c0_i32_0 = arith.constant 0 : i32
    %c0_i32_1 = arith.constant 0 : i32
    return %arg0, %c0_i32, %c0_i32_0 : i32, i32, i32
  }
  func.func @transform_1(%arg0: i32) -> (i32, i32, i32) {
    %c0_i32 = arith.constant 0 : i32
    %c0_i32_0 = arith.constant 0 : i32
    %c0_i32_1 = arith.constant 0 : i32
    return %arg0, %c0_i32, %c0_i32_0 : i32, i32, i32
  }
  func.func @transform_2(%arg0: i32) -> (i32, i32, i32) {
    %c0_i32 = arith.constant 0 : i32
    %c0_i32_0 = arith.constant 0 : i32
    %c0_i32_1 = arith.constant 0 : i32
    %c0_i32_2 = arith.constant 0 : i32
    return %c0_i32, %c0_i32_0, %c0_i32_1 : i32, i32, i32
  }
  func.func @transform_3(%arg0: i32) -> (i32, i32) {
    %c0_i32 = arith.constant 0 : i32
    %c0_i32_0 = arith.constant 0 : i32
    %c0_i32_1 = arith.constant 0 : i32
    return %c0_i32, %c0_i32_0 : i32, i32
  }
  func.func @transform_4(%arg0: i32) -> (i32, i32, i32) {
    %c0_i32 = arith.constant 0 : i32
    %c0_i32_0 = arith.constant 0 : i32
    %c0_i32_1 = arith.constant 0 : i32
    return %arg0, %c0_i32, %c0_i32_0 : i32, i32, i32
  }
}

</mosaic_0001>

<bundles_post_ra>
// kernel: tpu_custom_call.1
= control target key start
LH: loop header
LB: loop body
LE: loop exit
PB: predicated region body
PF: predicated region fallthrough
CT: control target
= control target key end

     0   :  { %s4452_s0 = inlined_call_operand.hbm [shape: f32[4,16,256], index: 0, kind: input, shape index: {}]   ;;  %s4453_s1 = inlined_call_operand.hbm [shape: f32[4,8,256], index: 1, kind: input, shape index: {}]   ;;  %s4454_s2 = inlined_call_operand.hbm [shape: f32[4,256,256], index: 2, kind: input, shape index: {}]   ;;  %s4455_s3 = inlined_call_operand.hbm [shape: f32[8,256], index: 3, kind: input, shape index: {}]   ;;  %s4456_s4 = inlined_call_operand.hbm [shape: f32[4,16,256], index: 4, kind: output, shape index: {}]  }
   0x1   :  { %4460 = sst [smem:[#allocation16_spill]] %s4452_s0 }
   0x2   :  { %4461 = sst [smem:[#allocation17_spill]] %s4454_s2 }
   0x3   :  { %9 = vsyncpa [#allocation3], 0 }
   0x4   :  { %11 = vsyncpa [#allocation3 + $0x1], 0 }
   0x5   :  { %12 = vsyncpa [#allocation6], 0 }
   0x6   :  { %14 = vsyncpa [#allocation6 + $0x1], 0 }
   0x7   :  { %15 = vsyncpa [#allocation9], 0 }
   0x8   :  { %16 = vsyncpa [#allocation4], 0 }
   0x9   :  { %18 = vsyncpa [#allocation4 + $0x1], 0  ;;  %s3768_s15 = smov 0   ;;  %s3770_s16 = smov 0  }
   0xa   :  { %s3772_s17 = smov 0   ;;  %s3774_s18 = smov 0  }
   0xb LB: > { %s3789_s19 = sadd.s32 4294967295, %s3729_s18   ;;  %s3289_s20 = sadd.s32 4294967294, %s3729_s18   ;;  %s3729_s18 = sphi %s3774_s18, %s4483_s18   ;;  %s3725_s17 = sphi %s3772_s17, %s4482_s17   ;;  %s3721_s16 = sphi %s3770_s16, %s4481_s16   ;;  %s3717_s15 = sphi %s3768_s15, %s4480_s15  }
   0xc   : > { %p44_p0 = scmp.ne.s32.totalorder %s3721_s16, %s3717_s15  ;;  %p4457_p1 = scmp.eq.s32.totalorder %s3789_s19, 0 }
   0xd   : > { %p136_p2 = scmp.eq.s32.totalorder %s3789_s19, 1  ;;  %p142_p3 = scmp.eq.s32.totalorder %s3289_s20, 1 }
   0xe   : > { %p3798_p4 = por %p4457_p1, %p44_p0  ;;  %p3290_p5 = scmp.ge.s32.totalorder %s3729_s18, 1 }
   0xf   : > { %p3803_p6 = por %p142_p3, %p44_p0  ;;  %p149_p7 = scmp.lt.s32.totalorder %s3729_s18, 3 }
  0x10   : > { %s4462_s21 = scalar_select %p3798_p4, 1, 0 }
  0x11   : > { %s4463_s22 = scalar_select %p3803_p6, 1, 0 }
  0x12   : > { %p3808_p8 = pnand %p3290_p5, %p149_p7  ;;  %s3731_s24 = smov [#allocation7]  }
  0x13   : > { %s161_s25 = sshll.u32 %s3731_s24, 4  ;;  %s3732_s27 = smov [#allocation8]   ;;  %s162_s25 = int_to_ptr.vmem [resolvable:$true] %s161_s25 }
  0x14   : > { %p3430_p9 = pneg %p3808_p8  ;;  %s175_s28 = sshll.u32 %s3732_s27, 4  ;;  %s176_s28 = int_to_ptr.vmem [resolvable:$true] %s175_s28 }
  0x15   : > { %s3556_s29 = scalar_lea.vmem %s162_s25, 32768  ;;  %p3564_p5 = scmp.lt.s32.totalorder %s162_s25, %s162_s25 }
  0x16   : > { %p3817_p11 = pnand %p3430_p9, %p4457_p1  ;;  %p3557_p13 = scmp.ne.s32.totalorder %s162_s25, %s3556_s29 }
  0x17   : > { %p3565_p7 = scmp.lt.s32.totalorder %s3556_s29, %s3556_s29 }
  0x18   : > { %p3547_p12 = pneg %p3817_p11 }
  0x19   : > { %p3566_p10 = por %p3565_p7, %p3564_p5 }
  0x1a   : > { %p3559_p0 = pnand %p3557_p13, %p3547_p12 }
  0x1c   : > { %p3560_p3 = pneg %p3559_p0 }
  0x1e   : > { %p3567_p9 = pnand %p3566_p10, %p3560_p3 }
  0x20   : > { %3570 = shalt.err (!%p3567_p9)
}
  0x21   : > { %s3733_s30 = smov 256   ;;  %s3734_s5 = smov 16  }
  0x22   : > { %s4466_s2 = sld [smem:[#allocation17_spill]]  ;;  %s3582_s8 = scalar_lea.vmem %s176_s28, 256 }
  0x23   : > { %p3583_p13 = scmp.ne.s32.totalorder %s176_s28, %s3582_s8  ;;  %p3590_p10 = scmp.lt.s32.totalorder %s176_s28, %s176_s28 }
  0x24   : > { %p3591_p3 = scmp.lt.s32.totalorder %s3582_s8, %s3582_s8 }
  0x25   : > { %p3585_p0 = pnand %p3583_p13, %p3547_p12 }
  0x26   : > { %p3592_p7 = por %p3591_p3, %p3590_p10 }
  0x27   : > { %p3586_p5 = pneg %p3585_p0 }
  0x28   : > { %3433 = dma.hbm_to_vmem [thread:$0]  (!%p3817_p11), %s4466_s2, 32768, %s162_s25, [#allocation6], %s3733_s30, %s3733_s30, %s3734_s5  }
  0x29   : > { %p3593_p9 = pnand %p3592_p7, %p3586_p5 }
  0x2b   : > { %3596 = shalt.err (!%p3593_p9)
}
  0x2c   : > { %3436 = dma.hbm_to_vmem [thread:$0]  (!%p3817_p11), %s4455_s3, 256, %s176_s28, [#allocation9]  }
  0x2d   : > { %s3843_s11 = sadd.s32 1, %s3729_s18   ;;  %s31_s12 = sadd.s32 1, %s3725_s17 }
  0x2e   : > { %s28_s13 = ssub.s32 %s3729_s18, %s3843_s11  ;;  %p38_p12 = scmp.ne.s32.totalorder %s3725_s17, %s3721_s16 }
  0x2f   : > { %p29_p13 = scmp.eq.s32.totalorder %s28_s13, 0  ;;  %p39_p0 = scmp.eq.s32.totalorder %s3729_s18, 0 }
  0x30   : > { %p3853_p5 = por %p136_p2, %p38_p12  ;;  %p3450_p10 = scmp.lt.s32.totalorder %s3729_s18, 2 }
  0x31   : > { %s3859_s20 = scalar_select %p29_p13, %s3725_s17, %s31_s12  }
  0x32   : > { %s4467_s14 = scalar_select %p3853_p5, 1, 0 }
  0x33   : > { %p40_p3 = por %p39_p0, %p38_p12  ;;  %s3862_s24 = sand.u32 1, %s3725_s17  }
  0x34   : > { %s3294_s25 = sshll.u32 %s3862_s24, 6  ;;  %s3347_s26 = sshll.u32 %s3729_s18, 10 }
  0x35   : > { %s4468_s0 = sld [smem:[#allocation16_spill]]  ;;  %s190_s6 = scalar_lea.vmem [#allocation2], %s3294_s25 }
  0x36   : > { %s198_s7 = sshll.u32 %s190_s6, 4  ;;  %p3873_p2 = pnand %p3450_p10, %p40_p3  ;;  %s3871_s7 = int_to_ptr.vmem [resolvable:$true] %s198_s7 }
  0x37   : > { %s187_s12 = scalar_lea.sflag [#allocation3], %s3862_s24 }
  0x38   : > { %p3599_p7 = pneg %p3873_p2 }
  0x3b   : > { %s3869_s29 = scalar_lea.hbm %s4468_s0, %s3347_s26  ;;  %s3602_s27 = scalar_lea.hbm %s4468_s0, 2048 }
  0x3c   : > { %s3597_s13 = scalar_lea.hbm %s3869_s29, 1024  ;;  %p3603_p13 = scmp.lt.s32.totalorder %s3869_s29, %s4468_s0 }
  0x3d   : > { %p3598_p11 = scmp.ne.s32.totalorder %s3869_s29, %s3597_s13  ;;  %p3604_p0 = scmp.lt.s32.totalorder %s3602_s27, %s3597_s13 }
  0x3f   : > { %p3600_p9 = pnand %p3599_p7, %p3598_p11  ;;  %p3605_p10 = por %p3604_p0, %p3603_p13 }
  0x41   : > { %p3601_p12 = pneg %p3600_p9 }
  0x43   : > { %p3606_p3 = pnand %p3605_p10, %p3601_p12 }
  0x45   : > { %3609 = shalt.err (!%p3606_p3)
}
  0x46   : > { %s3610_s9 = scalar_lea.vmem %s3871_s7, 1024  ;;  %s3735_s25 = smov [#allocation2]  }
  0x47   : > { %p3611_p1 = scmp.ne.s32.totalorder %s3871_s7, %s3610_s9  ;;  %s3615_s26 = sshll.u32 %s3735_s25, 4  ;;  %s3616_s26 = int_to_ptr.vmem [resolvable:$false] %s3615_s26 }
  0x48   : > { %s3617_s10 = scalar_lea.vmem %s3616_s26, 2048  ;;  %p3618_p6 = scmp.lt.s32.totalorder %s3871_s7, %s3616_s26 }
  0x49   : > { %p3613_p11 = pnand %p3611_p1, %p3599_p7  ;;  %p3619_p5 = scmp.lt.s32.totalorder %s3617_s10, %s3610_s9 }
  0x4b   : > { %p3614_p9 = pneg %p3613_p11  ;;  %p3620_p4 = por %p3619_p5, %p3618_p6 }
  0x4d   : > { %p3621_p13 = pnand %p3620_p4, %p3614_p9 }
  0x4f   : > { %3624 = shalt.err (!%p3621_p13)
}
  0x50   : > { %3440 = dma.hbm_to_vmem [thread:$0]  (!%p3873_p2), %s3869_s29, 1024, %s3871_s7, %s187_s12, %s3733_s30, %s3733_s30, %s3734_s5  }
  0x51   : > { %s3349_s13 = sshll.u32 %s3729_s18, 9  ;;  %s4470_s28 = sshll.u32 %s3862_s24, 5 }
  0x52   : > { %s3913_s10 = scalar_lea.hbm %s4453_s1, %s3349_s13  ;;  %s212_s6 = scalar_lea.vmem [#allocation5], %s4470_s28 }
  0x53   : > { %s220_s25 = sshll.u32 %s212_s6, 4  ;;  %s4471_s26 = sand.u32 1, %s3729_s18   ;;  %s3917_s25 = int_to_ptr.vmem [resolvable:$true] %s220_s25 }
  0x54   : > { %s209_s0 = scalar_lea.sflag [#allocation6], %s4471_s26  ;;  %s3625_s2 = scalar_lea.hbm %s3913_s10, 512 }
  0x55   : > { %p3626_p1 = scmp.ne.s32.totalorder %s3913_s10, %s3625_s2  ;;  %s3630_s12 = scalar_lea.hbm %s4453_s1, 1024 }
  0x56   : > { %p3631_p5 = scmp.lt.s32.totalorder %s3913_s10, %s4453_s1  ;;  %p3632_p12 = scmp.lt.s32.totalorder %s3630_s12, %s3625_s2 }
  0x57   : > { %p3628_p4 = pnand %p3626_p1, %p3599_p7 }
  0x58   : > { %p3633_p0 = por %p3632_p12, %p3631_p5 }
  0x59   : > { %p3629_p6 = pneg %p3628_p4 }
  0x5b   : > { %p3634_p10 = pnand %p3633_p0, %p3629_p6 }
  0x5d   : > { %3637 = shalt.err (!%p3634_p10)
}
  0x5e   : > { %s3638_s27 = scalar_lea.vmem %s3917_s25, 512  ;;  %s3736_s9 = smov [#allocation5]  }
  0x5f   : > { %p3639_p3 = scmp.ne.s32.totalorder %s3917_s25, %s3638_s27  ;;  %s3643_s28 = sshll.u32 %s3736_s9, 4  ;;  %s3644_s28 = int_to_ptr.vmem [resolvable:$false] %s3643_s28 }
  0x60   : > { %s3645_s6 = scalar_lea.vmem %s3644_s28, 1024  ;;  %p3646_p13 = scmp.lt.s32.totalorder %s3917_s25, %s3644_s28 }
  0x61   : > { %p3641_p11 = pnand %p3639_p3, %p3599_p7  ;;  %p3647_p1 = scmp.lt.s32.totalorder %s3645_s6, %s3638_s27 }
  0x63   : > { %p3642_p9 = pneg %p3641_p11  ;;  %p3648_p4 = por %p3647_p1, %p3646_p13 }
  0x65   : > { %p3649_p5 = pnand %p3648_p4, %p3642_p9 }
  0x67   : > { %3652 = shalt.err (!%p3649_p5)
}
  0x68   : > { %3443 = dma.hbm_to_vmem [thread:$0]  (!%p3873_p2), %s3913_s10, 512, %s3917_s25, %s209_s0, %s3733_s30, %s3733_s30, %s3734_s5  }
  0x69   : > { %232 = sbr.rel (%p3808_p8) target bundleno = 1694 (0x69e), region = 36  ;;  %s3949_s2 = sand.u32 (!%p3808_p8), 1, %s3721_s16  }
  0x6a   : > { %s3303_s26 = sshll.u32 (!%p3808_p8), %s3949_s2, 6  ;;  %s235_s29 = scalar_lea.sflag (!%p3808_p8), [#allocation3], %s3949_s2 }
  0x6b   : > { %s3955_s8 = scalar_lea.vmem (!%p3808_p8), [#allocation2], %s3303_s26  ;;  %p4472_p7 = scmp.ne.s32.totalorder (!%p3808_p8), %s4462_s21, 0 }
  0x6e   : > { %3696 = dma.done.wait (%p4472_p7), %s235_s29, 1024  }
  0x6f   : > { %3698 = vsyncadd (%p4472_p7), %s235_s29, 4294966272  ;;  %s243_s0 = sand.u32 1, %s3789_s19   ;;  %s3304_s23 = sshll.u32 %s3949_s2, 5 }
  0x70   : > { %s244_s30 = scalar_lea.sflag [#allocation6], %s243_s0  ;;  %s3963_s5 = scalar_lea.vmem [#allocation5], %s3304_s23 }
  0x71   : > { %3700 = dma.done.wait (%p4472_p7), %s244_s30, 512  }
  0x72   : > { %3702 = vsyncadd (%p4472_p7), %s244_s30, 4294966784  ;;  %p4473_p8 = scmp.eq.s32.totalorder %s3789_s19, 0 }
  0x74   : > { %3704 = dma.done.wait (%p4473_p8), [#allocation6], 32768   ;;  %p4474_p2 = pmov %p4473_p8 }
  0x76   : > { %3706 = vsyncadd (%p4474_p2), [#allocation6], 4294934528  ;;  %p4475_p6 = pmov %p4474_p2 }
  0x77   : > { %p4476_p12 = pmov %p4474_p2 }
  0x78   : > { %3708 = dma.done.wait (%p4475_p6), [#allocation9], 256  }
  0x79   : > { %3710 = vsyncadd (%p4476_p12), [#allocation9], 4294967040  ;;  %v333_v0 = vld [vmem:[#allocation7 + $0xf8] sm:$0xff]  ;;  %v332_v2 = vld [vmem:[#allocation7 + $0xf0] sm:$0xff]  ;;  %vm1999_vm0 = vcmask 64512   ;;  %s284_s21 = scalar_lea.vmem [#allocation10], %s3303_s26 }
  0x7a   : > { %v495_v1 = vld [vmem:[#allocation7 + $0x2f8] sm:$0xff]  ;;  %374 = vmatprep.subr.mxu0 %v333_v0  ;;  %v494_v3 = vld [vmem:[#allocation7 + $0x2f0] sm:$0xff]  ;;  %v331_v4 = vld [vmem:[#allocation7 + $0xe8] sm:$0xff]  ;;  %s3351_s10 = sshll.u32 %s3789_s19, 10  ;;  %s3174_s25 = sshll.u32 %s284_s21, 4  ;;  %s4409_s25 = int_to_ptr.vmem [resolvable:$true] %s3174_s25 }
  0x7b   : > { %536 = vmatprep.subr.mxu1 %v495_v1  ;;  %v493_v5 = vld [vmem:[#allocation7 + $0x2e8] sm:$0xff]  ;;  %375 = vmatpush1.msra.mxu0 %v332_v2  ;;  %v330_v6 = vld [vmem:[#allocation7 + $0xe0] sm:$0xff]  ;;  %v329_v8 = vld [vmem:[#allocation7 + $0xd8] sm:$0xff]  ;;  %s4407_s24 = scalar_lea.hbm %s4456_s4, %s3351_s10  ;;  %s3160_s19 = scalar_lea.sflag [#allocation4], %s3949_s2 }
  0x7c   : > { %537 = vmatpush1.msra.mxu1 %v494_v3  ;;  %v492_v7 = vld [vmem:[#allocation7 + $0x2e0] sm:$0xff]  ;;  %376 = vmatprep.subr.mxu0 %v331_v4  ;;  %v491_v9 = vld [vmem:[#allocation7 + $0x2d8] sm:$0xff]  ;;  %v328_v10 = vld [vmem:[#allocation7 + $0xd0] sm:$0xff]  ;;  %s3653_s13 = scalar_lea.vmem %s4409_s25, 1024  ;;  %p4477_p10 = scmp.ne.s32.totalorder %s4467_s14, 0 }
  0x7d   : > { %538 = vmatprep.subr.mxu1 %v493_v5  ;;  %v490_v11 = vld [vmem:[#allocation7 + $0x2d0] sm:$0xff]  ;;  %377 = vmatpush1.msra.mxu0 %v330_v6  ;;  %v327_v12 = vld [vmem:[#allocation7 + $0xc8] sm:$0xff]  ;;  %v326_v14 = vld [vmem:[#allocation7 + $0xc0] sm:$0xff]  ;;  %p3654_p0 = scmp.ne.s32.totalorder %s4409_s25, %s3653_s13  ;;  %s3740_s27 = smov [#allocation10]  }
  0x7e   : > { %539 = vmatpush1.msra.mxu1 %v492_v7  ;;  %v489_v13 = vld [vmem:[#allocation7 + $0x2c8] sm:$0xff]  ;;  %378 = vmatprep.subr.mxu0 %v329_v8  ;;  %v488_v15 = vld [vmem:[#allocation7 + $0x2c0] sm:$0xff]  ;;  %v325_v16 = vld [vmem:[#allocation7 + $0xb8] sm:$0xff]  ;;  %s3657_s9 = sshll.u32 %s3740_s27, 4  ;;  %s3658_s9 = int_to_ptr.vmem [resolvable:$false] %s3657_s9 }
  0x7f   : > { %540 = vmatprep.subr.mxu1 %v491_v9  ;;  %379 = vmatpush1.msra.mxu0 %v328_v10  ;;  %v487_v17 = vld [vmem:[#allocation7 + $0x2b8] sm:$0xff]  ;;  %v324_v18 = vld [vmem:[#allocation7 + $0xb0] sm:$0xff]  ;;  %v323_v20 = vld [vmem:[#allocation7 + $0xa8] sm:$0xff]  ;;  %p3655_p3 = pnand %p3654_p0, %p4477_p10  ;;  %s3659_s28 = scalar_lea.vmem %s3658_s9, 2048 }
  0x80   : > { %541 = vmatpush1.msra.mxu1 %v490_v11  ;;  %380 = vmatprep.subr.mxu0 %v327_v12  ;;  %v486_v19 = vld [vmem:[#allocation7 + $0x2b0] sm:$0xff]  ;;  %v485_v21 = vld [vmem:[#allocation7 + $0x2a8] sm:$0xff]  ;;  %v322_v22 = vld [vmem:[#allocation7 + $0xa0] sm:$0xff]  ;;  %p3660_p9 = scmp.lt.s32.totalorder %s4409_s25, %s3658_s9  ;;  %p3661_p13 = scmp.lt.s32.totalorder %s3659_s28, %s3653_s13 }
  0x81   : > { %542 = vmatprep.subr.mxu1 %v489_v13  ;;  %381 = vmatpush1.msra.mxu0 %v326_v14  ;;  %v484_v23 = vld [vmem:[#allocation7 + $0x2a0] sm:$0xff]  ;;  %v321_v24 = vld [vmem:[#allocation7 + $0x98] sm:$0xff]  ;;  %v320_v26 = vld [vmem:[#allocation7 + $0x90] sm:$0xff]  ;;  %p3656_p11 = pneg %p3655_p3 }
  0x82   : > { %543 = vmatpush1.msra.mxu1 %v488_v15  ;;  %382 = vmatprep.subr.mxu0 %v325_v16  ;;  %v483_v25 = vld [vmem:[#allocation7 + $0x298] sm:$0xff]  ;;  %v482_v27 = vld [vmem:[#allocation7 + $0x290] sm:$0xff]  ;;  %v319_v28 = vld [vmem:[#allocation7 + $0x88] sm:$0xff]  ;;  %p3662_p1 = por %p3661_p13, %p3660_p9 }
  0x83   : > { %544 = vmatprep.subr.mxu1 %v487_v17  ;;  %383 = vmatpush1.msra.mxu0 %v324_v18  ;;  %v481_v29 = vld [vmem:[#allocation7 + $0x288] sm:$0xff]  ;;  %v318_v30 = vld [vmem:[#allocation7 + $0x80] sm:$0xff]  ;;  %v317_v32 = vld [vmem:[#allocation7 + $0x78] sm:$0xff] }
  0x84   : > { %545 = vmatpush1.msra.mxu1 %v486_v19  ;;  %384 = vmatprep.subr.mxu0 %v323_v20  ;;  %v480_v31 = vld [vmem:[#allocation7 + $0x280] sm:$0xff]  ;;  %v479_v33 = vld [vmem:[#allocation7 + $0x278] sm:$0xff]  ;;  %v316_v34 = vld [vmem:[#allocation7 + $0x70] sm:$0xff]  ;;  %p3663_p4 = pnand %p3662_p1, %p3656_p11 }
  0x85   : > { %546 = vmatprep.subr.mxu1 %v485_v21  ;;  %385 = vmatpush1.msra.mxu0 %v322_v22  ;;  %v478_v35 = vld [vmem:[#allocation7 + $0x270] sm:$0xff]  ;;  %v315_v36 = vld [vmem:[#allocation7 + $0x68] sm:$0xff]  ;;  %v314_v38 = vld [vmem:[#allocation7 + $0x60] sm:$0xff] }
  0x86   : > { %547 = vmatpush1.msra.mxu1 %v484_v23  ;;  %386 = vmatprep.subr.mxu0 %v321_v24  ;;  %v477_v37 = vld [vmem:[#allocation7 + $0x268] sm:$0xff]  ;;  %v476_v39 = vld [vmem:[#allocation7 + $0x260] sm:$0xff]  ;;  %v313_v40 = vld [vmem:[#allocation7 + $0x58] sm:$0xff] }
  0x87   : > { %548 = vmatprep.subr.mxu1 %v483_v25  ;;  %387 = vmatpush1.msra.mxu0 %v320_v26  ;;  %v475_v41 = vld [vmem:[#allocation7 + $0x258] sm:$0xff]  ;;  %v312_v42 = vld [vmem:[#allocation7 + $0x50] sm:$0xff]  ;;  %v311_v44 = vld [vmem:[#allocation7 + $0x48] sm:$0xff] }
  0x88   : > { %549 = vmatpush1.msra.mxu1 %v482_v27  ;;  %388 = vmatprep.subr.mxu0 %v319_v28  ;;  %v474_v43 = vld [vmem:[#allocation7 + $0x250] sm:$0xff]  ;;  %v473_v45 = vld [vmem:[#allocation7 + $0x248] sm:$0xff]  ;;  %v310_v46 = vld [vmem:[#allocation7 + $0x40] sm:$0xff] }
  0x89   : > { %550 = vmatprep.subr.mxu1 %v481_v29  ;;  %389 = vmatpush1.msra.mxu0 %v318_v30  ;;  %v472_v47 = vld [vmem:[#allocation7 + $0x240] sm:$0xff]  ;;  %v309_v48 = vld [vmem:[#allocation7 + $0x38] sm:$0xff]  ;;  %v308_v50 = vld [vmem:[#allocation7 + $0x30] sm:$0xff] }
  0x8a   : > { %551 = vmatpush1.msra.mxu1 %v480_v31  ;;  %390 = vmatprep.subr.mxu0 %v317_v32  ;;  %v471_v49 = vld [vmem:[#allocation7 + $0x238] sm:$0xff]  ;;  %v470_v51 = vld [vmem:[#allocation7 + $0x230] sm:$0xff]  ;;  %v307_v52 = vld [vmem:[#allocation7 + $0x28] sm:$0xff] }
  0x8b   : > { %552 = vmatprep.subr.mxu1 %v479_v33  ;;  %391 = vmatpush1.msra.mxu0 %v316_v34  ;;  %v469_v53 = vld [vmem:[#allocation7 + $0x228] sm:$0xff]  ;;  %v306_v54 = vld [vmem:[#allocation7 + $0x20] sm:$0xff]  ;;  %v305_v56 = vld [vmem:[#allocation7 + $0x18] sm:$0xff] }
  0x8c   : > { %553 = vmatpush1.msra.mxu1 %v478_v35  ;;  %392 = vmatprep.subr.mxu0 %v315_v36  ;;  %v468_v55 = vld [vmem:[#allocation7 + $0x220] sm:$0xff]  ;;  %v467_v57 = vld [vmem:[#allocation7 + $0x218] sm:$0xff]  ;;  %v304_v58 = vld [vmem:[#allocation7 + $0x10] sm:$0xff] }
  0x8d   : > { %554 = vmatprep.subr.mxu1 %v477_v37  ;;  %393 = vmatpush1.msra.mxu0 %v314_v38  ;;  %v466_v59 = vld [vmem:[#allocation7 + $0x210] sm:$0xff]  ;;  %v303_v60 = vld [vmem:[#allocation7 + $0x8] sm:$0xff]  ;;  %v302_v62 = vld [vmem:[#allocation7] sm:$0xff] }
  0x8e   : > { %555 = vmatpush1.msra.mxu1 %v476_v39  ;;  %394 = vmatprep.subr.mxu0 %v313_v40  ;;  %v465_v61 = vld [vmem:[#allocation7 + $0x208] sm:$0xff]  ;;  %v464_v63 = vld [vmem:[#allocation7 + $0x200] sm:$0xff]  ;;  %v365_v0 = vld [vmem:[#allocation7 + $0x1f8] sm:$0xff] }
  0x8f   : > { %556 = vmatprep.subr.mxu1 %v475_v41  ;;  %395 = vmatpush1.msra.mxu0 %v312_v42  ;;  %v527_v1 = vld [vmem:[#allocation7 + $0x3f8] sm:$0xff]  ;;  %v364_v2 = vld [vmem:[#allocation7 + $0x1f0] sm:$0xff]  ;;  %v363_v4 = vld [vmem:[#allocation7 + $0x1e8] sm:$0xff] }
  0x90   : > { %557 = vmatpush1.msra.mxu1 %v474_v43  ;;  %396 = vmatprep.subr.mxu0 %v311_v44  ;;  %v526_v3 = vld [vmem:[#allocation7 + $0x3f0] sm:$0xff]  ;;  %v525_v5 = vld [vmem:[#allocation7 + $0x3e8] sm:$0xff]  ;;  %v362_v6 = vld [vmem:[#allocation7 + $0x1e0] sm:$0xff] }
  0x91   : > { %558 = vmatprep.subr.mxu1 %v473_v45  ;;  %397 = vmatpush1.msra.mxu0 %v310_v46  ;;  %v524_v7 = vld [vmem:[#allocation7 + $0x3e0] sm:$0xff]  ;;  %v361_v8 = vld [vmem:[#allocation7 + $0x1d8] sm:$0xff]  ;;  %v360_v10 = vld [vmem:[#allocation7 + $0x1d0] sm:$0xff] }
  0x92   : > { %559 = vmatpush1.msra.mxu1 %v472_v47  ;;  %398 = vmatprep.subr.mxu0 %v309_v48  ;;  %v523_v9 = vld [vmem:[#allocation7 + $0x3d8] sm:$0xff]  ;;  %v522_v11 = vld [vmem:[#allocation7 + $0x3d0] sm:$0xff]  ;;  %v359_v12 = vld [vmem:[#allocation7 + $0x1c8] sm:$0xff] }
  0x93   : > { %560 = vmatprep.subr.mxu1 %v471_v49  ;;  %399 = vmatpush1.msra.mxu0 %v308_v50  ;;  %v521_v13 = vld [vmem:[#allocation7 + $0x3c8] sm:$0xff]  ;;  %v358_v14 = vld [vmem:[#allocation7 + $0x1c0] sm:$0xff]  ;;  %v357_v16 = vld [vmem:[#allocation7 + $0x1b8] sm:$0xff] }
  0x94   : > { %561 = vmatpush1.msra.mxu1 %v470_v51  ;;  %400 = vmatprep.subr.mxu0 %v307_v52  ;;  %v520_v15 = vld [vmem:[#allocation7 + $0x3c0] sm:$0xff]  ;;  %v519_v17 = vld [vmem:[#allocation7 + $0x3b8] sm:$0xff]  ;;  %v356_v18 = vld [vmem:[#allocation7 + $0x1b0] sm:$0xff] }
  0x95   : > { %562 = vmatprep.subr.mxu1 %v469_v53  ;;  %401 = vmatpush1.msra.mxu0 %v306_v54  ;;  %v518_v19 = vld [vmem:[#allocation7 + $0x3b0] sm:$0xff]  ;;  %v355_v20 = vld [vmem:[#allocation7 + $0x1a8] sm:$0xff]  ;;  %v354_v22 = vld [vmem:[#allocation7 + $0x1a0] sm:$0xff] }
  0x96   : > { %563 = vmatpush1.msra.mxu1 %v468_v55  ;;  %402 = vmatprep.subr.mxu0 %v305_v56  ;;  %v517_v21 = vld [vmem:[#allocation7 + $0x3a8] sm:$0xff]  ;;  %v516_v23 = vld [vmem:[#allocation7 + $0x3a0] sm:$0xff]  ;;  %v353_v24 = vld [vmem:[#allocation7 + $0x198] sm:$0xff] }
  0x97   : > { %564 = vmatprep.subr.mxu1 %v467_v57  ;;  %403 = vmatpush1.msra.mxu0 %v304_v58  ;;  %v515_v25 = vld [vmem:[#allocation7 + $0x398] sm:$0xff]  ;;  %v352_v26 = vld [vmem:[#allocation7 + $0x190] sm:$0xff]  ;;  %v351_v28 = vld [vmem:[#allocation7 + $0x188] sm:$0xff] }
  0x98   : > { %565 = vmatpush1.msra.mxu1 %v466_v59  ;;  %404 = vmatprep.subr.mxu0 %v303_v60  ;;  %v514_v27 = vld [vmem:[#allocation7 + $0x390] sm:$0xff]  ;;  %v513_v29 = vld [vmem:[#allocation7 + $0x388] sm:$0xff]  ;;  %v350_v30 = vld [vmem:[#allocation7 + $0x180] sm:$0xff] }
  0x99   : > { %566 = vmatprep.subr.mxu1 %v465_v61  ;;  %405 = vmatpush1.msra.mxu0 %v302_v62  ;;  %v512_v31 = vld [vmem:[#allocation7 + $0x380] sm:$0xff]  ;;  %v349_v32 = vld [vmem:[#allocation7 + $0x178] sm:$0xff]  ;;  %v348_v34 = vld [vmem:[#allocation7 + $0x170] sm:$0xff] }
  0x9a   : > { %567 = vmatpush1.msra.mxu1 %v464_v63  ;;  %406 = vmatprep.subr.mxu0 %v365_v0  ;;  %v511_v33 = vld [vmem:[#allocation7 + $0x378] sm:$0xff]  ;;  %v510_v35 = vld [vmem:[#allocation7 + $0x370] sm:$0xff]  ;;  %v347_v36 = vld [vmem:[#allocation7 + $0x168] sm:$0xff] }
  0x9b   : > { %568 = vmatprep.subr.mxu1 %v527_v1  ;;  %407 = vmatpush2.msra.mxu0 %v364_v2  ;;  %v509_v37 = vld [vmem:[#allocation7 + $0x368] sm:$0xff]  ;;  %v346_v38 = vld [vmem:[#allocation7 + $0x160] sm:$0xff]  ;;  %v345_v40 = vld [vmem:[#allocation7 + $0x158] sm:$0xff] }
  0x9c   : > { %569 = vmatpush2.msra.mxu1 %v526_v3  ;;  %408 = vmatprep.subr.mxu0 %v363_v4  ;;  %v508_v39 = vld [vmem:[#allocation7 + $0x360] sm:$0xff]  ;;  %v507_v41 = vld [vmem:[#allocation7 + $0x358] sm:$0xff]  ;;  %v344_v42 = vld [vmem:[#allocation7 + $0x150] sm:$0xff] }
  0x9d   : > { %570 = vmatprep.subr.mxu1 %v525_v5  ;;  %409 = vmatpush2.msra.mxu0 %v362_v6  ;;  %v506_v43 = vld [vmem:[#allocation7 + $0x350] sm:$0xff]  ;;  %v343_v44 = vld [vmem:[#allocation7 + $0x148] sm:$0xff]  ;;  %v342_v46 = vld [vmem:[#allocation7 + $0x140] sm:$0xff] }
  0x9e   : > { %571 = vmatpush2.msra.mxu1 %v524_v7  ;;  %410 = vmatprep.subr.mxu0 %v361_v8  ;;  %v505_v45 = vld [vmem:[#allocation7 + $0x348] sm:$0xff]  ;;  %v504_v47 = vld [vmem:[#allocation7 + $0x340] sm:$0xff]  ;;  %v341_v48 = vld [vmem:[#allocation7 + $0x138] sm:$0xff] }
  0x9f   : > { %572 = vmatprep.subr.mxu1 %v523_v9  ;;  %411 = vmatpush2.msra.mxu0 %v360_v10  ;;  %v503_v49 = vld [vmem:[#allocation7 + $0x338] sm:$0xff]  ;;  %v340_v50 = vld [vmem:[#allocation7 + $0x130] sm:$0xff]  ;;  %v339_v52 = vld [vmem:[#allocation7 + $0x128] sm:$0xff] }
  0xa0   : > { %573 = vmatpush2.msra.mxu1 %v522_v11  ;;  %412 = vmatprep.subr.mxu0 %v359_v12  ;;  %v502_v51 = vld [vmem:[#allocation7 + $0x330] sm:$0xff]  ;;  %v501_v53 = vld [vmem:[#allocation7 + $0x328] sm:$0xff]  ;;  %v338_v54 = vld [vmem:[#allocation7 + $0x120] sm:$0xff] }
  0xa1   : > { %574 = vmatprep.subr.mxu1 %v521_v13  ;;  %413 = vmatpush2.msra.mxu0 %v358_v14  ;;  %v500_v55 = vld [vmem:[#allocation7 + $0x320] sm:$0xff]  ;;  %v337_v56 = vld [vmem:[#allocation7 + $0x118] sm:$0xff]  ;;  %v336_v58 = vld [vmem:[#allocation7 + $0x110] sm:$0xff] }
  0xa2   : > { %575 = vmatpush2.msra.mxu1 %v520_v15  ;;  %414 = vmatprep.subr.mxu0 %v357_v16  ;;  %v499_v57 = vld [vmem:[#allocation7 + $0x318] sm:$0xff]  ;;  %v498_v59 = vld [vmem:[#allocation7 + $0x310] sm:$0xff]  ;;  %v335_v60 = vld [vmem:[#allocation7 + $0x108] sm:$0xff] }
  0xa3   : > { %576 = vmatprep.subr.mxu1 %v519_v17  ;;  %415 = vmatpush2.msra.mxu0 %v356_v18  ;;  %v497_v61 = vld [vmem:[#allocation7 + $0x308] sm:$0xff]  ;;  %v334_v62 = vld [vmem:[#allocation7 + $0x100] sm:$0xff]  ;;  %v291_v4 = vld [vmem:[%s3955_s8 + $0x18] sm:$0xff] }
  0xa4   : > { %577 = vmatpush2.msra.mxu1 %v518_v19  ;;  %416 = vmatprep.subr.mxu0 %v355_v20  ;;  %v289_v63 = vld [vmem:[%s3955_s8 + $0x8] sm:$0xff]  ;;  %v496_v0 = vld [vmem:[#allocation7 + $0x300] sm:$0xff]  ;;  %v3985_v5 = vld [vmem:[%s3963_s5 + $0x18] sm:$0xff] }
  0xa5   : > { %578 = vmatprep.subr.mxu1 %v517_v21  ;;  %417 = vmatpush2.msra.mxu0 %v354_v22  ;;  %v297_v1 = vld [vmem:[%s3963_s5 + $0x8] sm:$0xff]  ;;  %v288_v2 = vld [vmem:[%s3955_s8] sm:$0xff]  ;;  %v645_v6 = vld [vmem:[#allocation7 + $0x4f8] sm:$0xff] }
  0xa6   : > { %579 = vmatpush2.msra.mxu1 %v516_v23  ;;  %418 = vmatprep.subr.mxu0 %v353_v24  ;;  %v3981_v3 = vld [vmem:[%s3963_s5] sm:$0xff]  ;;  %v644_v7 = vld [vmem:[#allocation7 + $0x4f0] sm:$0xff]  ;;  %v293_v10 = vld [vmem:[%s3955_s8 + $0x28] sm:$0xff] }
  0xa7   : > { %580 = vmatprep.subr.mxu1 %v515_v25  ;;  %419 = vmatpush2.msra.mxu0 %v352_v26  ;;  %v290_v8 = vld [vmem:[%s3955_s8 + $0x10] sm:$0xff]  ;;  %v643_v11 = vld [vmem:[#allocation7 + $0x4e8] sm:$0xff]  ;;  %v642_v12 = vld [vmem:[#allocation7 + $0x4e0] sm:$0xff] }
  0xa8   : > { %581 = vmatpush2.msra.mxu1 %v514_v27  ;;  %420 = vmatprep.subr.mxu0 %v351_v28  ;;  %v3991_v9 = vld [vmem:[%s3963_s5 + $0x10] sm:$0xff]  ;;  %v641_v13 = vld [vmem:[#allocation7 + $0x4d8] sm:$0xff]  ;;  %v292_v14 = vld [vmem:[%s3955_s8 + $0x20] sm:$0xff] }
  0xa9   : > { %582 = vmatprep.subr.mxu1 %v513_v29  ;;  %421 = vmatpush2.msra.mxu0 %v350_v30  ;;  %v295_v15 = vld [vmem:[%s3955_s8 + $0x38] sm:$0xff]  ;;  %v640_v16 = vld [vmem:[#allocation7 + $0x4d0] sm:$0xff]  ;;  %v639_v17 = vld [vmem:[#allocation7 + $0x4c8] sm:$0xff] }
  0xaa   : > { %583 = vmatpush2.msra.mxu1 %v512_v31  ;;  %422 = vmatprep.subr.mxu0 %v349_v32  ;;  %v638_v18 = vld [vmem:[#allocation7 + $0x4c0] sm:$0xff]  ;;  %v294_v19 = vld [vmem:[%s3955_s8 + $0x30] sm:$0xff]  ;;  %v637_v20 = vld [vmem:[#allocation7 + $0x4b8] sm:$0xff] }
  0xab   : > { %584 = vmatprep.subr.mxu1 %v511_v33  ;;  %423 = vmatpush2.msra.mxu0 %v348_v34  ;;  %v636_v21 = vld [vmem:[#allocation7 + $0x4b0] sm:$0xff]  ;;  %v635_v22 = vld [vmem:[#allocation7 + $0x4a8] sm:$0xff]  ;;  %v634_v23 = vld [vmem:[#allocation7 + $0x4a0] sm:$0xff] }
  0xac   : > { %585 = vmatpush2.msra.mxu1 %v510_v35  ;;  %424 = vmatprep.subr.mxu0 %v347_v36  ;;  %v633_v24 = vld [vmem:[#allocation7 + $0x498] sm:$0xff]  ;;  %v632_v25 = vld [vmem:[#allocation7 + $0x490] sm:$0xff]  ;;  %v631_v26 = vld [vmem:[#allocation7 + $0x488] sm:$0xff] }
  0xad   : > { %586 = vmatprep.subr.mxu1 %v509_v37  ;;  %425 = vmatpush2.msra.mxu0 %v346_v38  ;;  %v630_v27 = vld [vmem:[#allocation7 + $0x480] sm:$0xff]  ;;  %v629_v28 = vld [vmem:[#allocation7 + $0x478] sm:$0xff]  ;;  %v628_v29 = vld [vmem:[#allocation7 + $0x470] sm:$0xff] }
  0xae   : > { %587 = vmatpush2.msra.mxu1 %v508_v39  ;;  %426 = vmatprep.subr.mxu0 %v345_v40  ;;  %v627_v30 = vld [vmem:[#allocation7 + $0x468] sm:$0xff]  ;;  %v626_v31 = vld [vmem:[#allocation7 + $0x460] sm:$0xff]  ;;  %v625_v32 = vld [vmem:[#allocation7 + $0x458] sm:$0xff] }
  0xaf   : > { %588 = vmatprep.subr.mxu1 %v507_v41  ;;  %427 = vmatpush2.msra.mxu0 %v344_v42  ;;  %v624_v33 = vld [vmem:[#allocation7 + $0x450] sm:$0xff]  ;;  %v623_v34 = vld [vmem:[#allocation7 + $0x448] sm:$0xff]  ;;  %v622_v35 = vld [vmem:[#allocation7 + $0x440] sm:$0xff] }
  0xb0   : > { %589 = vmatpush2.msra.mxu1 %v506_v43  ;;  %428 = vmatprep.subr.mxu0 %v343_v44  ;;  %v621_v36 = vld [vmem:[#allocation7 + $0x438] sm:$0xff]  ;;  %v620_v37 = vld [vmem:[#allocation7 + $0x430] sm:$0xff]  ;;  %v619_v38 = vld [vmem:[#allocation7 + $0x428] sm:$0xff] }
  0xb1   : > { %590 = vmatprep.subr.mxu1 %v505_v45  ;;  %429 = vmatpush2.msra.mxu0 %v342_v46  ;;  %v618_v39 = vld [vmem:[#allocation7 + $0x420] sm:$0xff]  ;;  %v617_v40 = vld [vmem:[#allocation7 + $0x418] sm:$0xff]  ;;  %v616_v41 = vld [vmem:[#allocation7 + $0x410] sm:$0xff] }
  0xb2   : > { %591 = vmatpush2.msra.mxu1 %v504_v47  ;;  %430 = vmatprep.subr.mxu0 %v341_v48  ;;  %v615_v42 = vld [vmem:[#allocation7 + $0x408] sm:$0xff]  ;;  %v614_v43 = vld [vmem:[#allocation7 + $0x400] sm:$0xff]  ;;  %v677_v44 = vld [vmem:[#allocation7 + $0x5f8] sm:$0xff] }
  0xb3   : > { %592 = vmatprep.subr.mxu1 %v503_v49  ;;  %431 = vmatpush2.msra.mxu0 %v340_v50  ;;  %v676_v45 = vld [vmem:[#allocation7 + $0x5f0] sm:$0xff]  ;;  %v675_v46 = vld [vmem:[#allocation7 + $0x5e8] sm:$0xff]  ;;  %v674_v47 = vld [vmem:[#allocation7 + $0x5e0] sm:$0xff] }
  0xb4   : > { %593 = vmatpush2.msra.mxu1 %v502_v51  ;;  %432 = vmatprep.subr.mxu0 %v339_v52  ;;  %v673_v48 = vld [vmem:[#allocation7 + $0x5d8] sm:$0xff]  ;;  %v672_v49 = vld [vmem:[#allocation7 + $0x5d0] sm:$0xff]  ;;  %v671_v50 = vld [vmem:[#allocation7 + $0x5c8] sm:$0xff] }
  0xb5   : > { %594 = vmatprep.subr.mxu1 %v501_v53  ;;  %433 = vmatpush2.msra.mxu0 %v338_v54  ;;  %v670_v51 = vld [vmem:[#allocation7 + $0x5c0] sm:$0xff]  ;;  %v669_v52 = vld [vmem:[#allocation7 + $0x5b8] sm:$0xff]  ;;  %v668_v53 = vld [vmem:[#allocation7 + $0x5b0] sm:$0xff] }
  0xb6   : > { %595 = vmatpush2.msra.mxu1 %v500_v55  ;;  %434 = vmatprep.subr.mxu0 %v337_v56  ;;  %v667_v54 = vld [vmem:[#allocation7 + $0x5a8] sm:$0xff]  ;;  %v666_v55 = vld [vmem:[#allocation7 + $0x5a0] sm:$0xff]  ;;  %v665_v56 = vld [vmem:[#allocation7 + $0x598] sm:$0xff] }
  0xb7   : > { %596 = vmatprep.subr.mxu1 %v499_v57  ;;  %435 = vmatpush2.msra.mxu0 %v336_v58  ;;  %v664_v57 = vld [vmem:[#allocation7 + $0x590] sm:$0xff]  ;;  %v663_v58 = vld [vmem:[#allocation7 + $0x588] sm:$0xff] }
  0xb8   : > { %597 = vmatpush2.msra.mxu1 %v498_v59  ;;  %436 = vmatprep.subr.mxu0 %v335_v60  ;;  %v662_v59 = vld [vmem:[#allocation7 + $0x580] sm:$0xff]  ;;  %v661_v60 = vld [vmem:[#allocation7 + $0x578] sm:$0xff] }
  0xb9   : > { %598 = vmatprep.subr.mxu1 %v497_v61  ;;  %437 = vmatpush2.msra.mxu0 %v334_v62  ;;  %v660_v61 = vld [vmem:[#allocation7 + $0x570] sm:$0xff]  ;;  %v659_v62 = vld [vmem:[#allocation7 + $0x568] sm:$0xff] }
  0xba   : > { %438 = vmatprep.mubr.f32.mxu0 %v289_v63  ;;  %599 = vmatpush2.msra.mxu1 %v496_v0  ;;  %v658_v63 = vld [vmem:[#allocation7 + $0x560] sm:$0xff]  ;;  %v657_v0 = vld [vmem:[#allocation7 + $0x558] sm:$0xff] }
  0xbb   : > { %600 = vmatprep.mubr.f32.mxu1 %v297_v1  ;;  %439 = vmatmul.mubr.f32.vlgmr.msra.gmra.mxu0 %v288_v2  ;;  %v655_v2 = vld [vmem:[#allocation7 + $0x548] sm:$0xff] }
  0xbc   : > { %601 = vmatmul.mubr.f32.vlgmr.msra.gmra.mxu1 %v3981_v3  ;;  %444 = vmatprep.mubr.f32.mxu0 %v291_v4  ;;  %v654_v4 = vld [vmem:[#allocation7 + $0x540] sm:$0xff] }
  0xbd   : > { %606 = vmatprep.mubr.f32.mxu1 %v3985_v5  ;;  %686 = vmatprep.subr.mxu0 %v645_v6  ;;  %v653_v6 = vld [vmem:[#allocation7 + $0x538] sm:$0xff] }
  0xbe   : > { %687 = vmatpush1.msra.mxu0 %v644_v7  ;;  %v652_v7 = vld [vmem:[#allocation7 + $0x530] sm:$0xff] }
  0xbf   : > { %445 = vmatmul.mubr.f32.gmra.mxu0 %v290_v8  ;;  %688 = vmatprep.subr.mxu0 %v643_v11  ;;  %v651_v8 = vld [vmem:[#allocation7 + $0x528] sm:$0xff]  ;;  %v649_v11 = vld [vmem:[#allocation7 + $0x518] sm:$0xff] }
  0xc0   : > { %607 = vmatmul.mubr.f32.gmra.mxu1 %v3991_v9  ;;  %450 = vmatprep.mubr.f32.mxu0 %v293_v10  ;;  %v650_v10 = vld [vmem:[#allocation7 + $0x520] sm:$0xff] }
  0xc1   : > { %689 = vmatpush1.msra.mxu0 %v642_v12  ;;  %v648_v12 = vld [vmem:[#allocation7 + $0x510] sm:$0xff] }
  0xc2   : > { %690 = vmatprep.subr.mxu0 %v641_v13  ;;  %v647_v13 = vld [vmem:[#allocation7 + $0x508] sm:$0xff] }
  0xc3   : > { %451 = vmatmul.mubr.f32.gmra.mxu0 %v292_v14  ;;  %v646_v14 = vld [vmem:[#allocation7 + $0x500] sm:$0xff] }
  0xc4   : > { %456 = vmatprep.mubr.f32.mxu0 %v295_v15  ;;  %691 = vmatpush1.msra.mxu0 %v640_v16  ;;  %v366_v15 = vlaneseq }
  0xc5   : > { %692 = vmatprep.subr.mxu0 %v639_v17  ;;  %v3737_v17 = vmov 1983009808  }
  0xc6   : > { %693 = vmatpush1.msra.mxu0 %v638_v18  ;;  %v4001_v16 = vshrl.u32 %v366_v15, 7  ;;  %v773_v18 = vunpack.c.l.s4 %v3737_v17 }
  0xc7   : > { %457 = vmatmul.mubr.f32.gmra.mxu0 %v294_v19  ;;  %694 = vmatprep.subr.mxu0 %v637_v20 }
  0xc8   : > { %695 = vmatpush1.msra.mxu0 %v636_v21  ;;  %750 = vmatprep.mubr.f32.mxu0 %v297_v1  ;;  %v656_v1 = vld [vmem:[#allocation7 + $0x550] sm:$0xff]  ;;  %v368_v19 = vsub.s32 0, %v4001_v16  ;;  %v530_v20 = vsub.s32 1, %v4001_v16  ;;  %v4005_v21 = vld [vmem:[#allocation8] sm:$0xff] }
  0xc9   : > { %696 = vmatprep.subr.mxu0 %v635_v22  ;;  %v774_v22 = vunpack.c.0.s8 %v773_v18 }
  0xca   : > { %697 = vmatpush1.msra.mxu0 %v634_v23  ;;  %v4007_v23 = vld [vmem:[#allocation8 + $0x8] sm:$0xff] }
  0xcb   : > { %698 = vmatprep.subr.mxu0 %v633_v24 }
  0xcc   : > { %699 = vmatpush1.msra.mxu0 %v632_v25  ;;  %v4014_v25 = vrot.slane %v4007_v23, %v368_v19 }
  0xcd   : > { %700 = vmatprep.subr.mxu0 %v631_v26 }
  0xce   : > { %701 = vmatpush1.msra.mxu0 %v630_v27  ;;  %v4017_v27 = vsub.s32 %v774_v22, %v4001_v16 }
  0xcf   : > { %702 = vmatprep.subr.mxu0 %v629_v28 }
  0xd0   : > { %703 = vmatpush1.msra.mxu0 %v628_v29  ;;  %v4020_v29 = vrot.slane %v4007_v23, %v530_v20 }
  0xd1   : > { %704 = vmatprep.subr.mxu0 %v627_v30 }
  0xd2   : > { %705 = vmatpush1.msra.mxu0 %v626_v31 }
  0xd3   : > { %706 = vmatprep.subr.mxu0 %v625_v32 }
  0xd4   : > { %707 = vmatpush1.msra.mxu0 %v624_v33 }
  0xd5   : > { %708 = vmatprep.subr.mxu0 %v623_v34 }
  0xd6   : > { %709 = vmatpush1.msra.mxu0 %v622_v35 }
  0xd7   : > { %710 = vmatprep.subr.mxu0 %v621_v36  ;;  %v3739_v36 = vmov 0.0  }
  0xd8   : > { %711 = vmatpush1.msra.mxu0 %v620_v37 }
  0xd9   : > { %712 = vmatprep.subr.mxu0 %v619_v38 }
  0xda   : > { %713 = vmatpush1.msra.mxu0 %v618_v39 }
  0xdb   : > { %714 = vmatprep.subr.mxu0 %v617_v40 }
  0xdc   : > { %715 = vmatpush1.msra.mxu0 %v616_v41 }
  0xdd   : > { %716 = vmatprep.subr.mxu0 %v615_v42 }
  0xde   : > { %717 = vmatpush1.msra.mxu0 %v614_v43 }
  0xdf   : > { %718 = vmatprep.subr.mxu0 %v677_v44 }
  0xe0   : > { %719 = vmatpush2.msra.mxu0 %v676_v45 }
  0xe1   : > { %720 = vmatprep.subr.mxu0 %v675_v46 }
  0xe2   : > { %721 = vmatpush2.msra.mxu0 %v674_v47 }
  0xe3   : > { %722 = vmatprep.subr.mxu0 %v673_v48 }
  0xe4   : > { %723 = vmatpush2.msra.mxu0 %v672_v49 }
  0xe5   : > { %724 = vmatprep.subr.mxu0 %v671_v50 }
  0xe6   : > { %725 = vmatpush2.msra.mxu0 %v670_v51 }
  0xe7   : > { %726 = vmatprep.subr.mxu0 %v669_v52 }
  0xe8   : > { %727 = vmatpush2.msra.mxu0 %v668_v53 }
  0xe9   : > { %728 = vmatprep.subr.mxu0 %v667_v54 }
  0xea   : > { %729 = vmatpush2.msra.mxu0 %v666_v55 }
  0xeb   : > { %730 = vmatprep.subr.mxu0 %v665_v56 }
  0xec   : > { %731 = vmatpush2.msra.mxu0 %v664_v57 }
  0xed   : > { %732 = vmatprep.subr.mxu0 %v663_v58 }
  0xee   : > { %733 = vmatpush2.msra.mxu0 %v662_v59 }
  0xef   : > { %734 = vmatprep.subr.mxu0 %v661_v60 }
  0xf0   : > { %735 = vmatpush2.msra.mxu0 %v660_v61 }
  0xf1   : > { %736 = vmatprep.subr.mxu0 %v659_v62 }
  0xf2   : > { %737 = vmatpush2.msra.mxu0 %v658_v63 }
  0xf3   : > { %738 = vmatprep.subr.mxu0 %v657_v0 }
  0xf4   : > { %739 = vmatpush2.msra.mxu0 %v656_v1 }
  0xf5   : > { %740 = vmatprep.subr.mxu0 %v655_v2 }
  0xf6   : > { %741 = vmatpush2.msra.mxu0 %v654_v4 }
  0xf7   : > { %742 = vmatprep.subr.mxu0 %v653_v6 }
  0xf8   : > { %743 = vmatpush2.msra.mxu0 %v652_v7 }
  0xf9   : > { %744 = vmatprep.subr.mxu0 %v651_v8 }
  0xfa   : > { %745 = vmatpush2.msra.mxu0 %v650_v10 }
  0xfb   : > { %746 = vmatprep.subr.mxu0 %v649_v11 }
  0xfc   : > { %747 = vmatpush2.msra.mxu0 %v648_v12 }
  0xfd   : > { %748 = vmatprep.subr.mxu0 %v647_v13 }
  0xfe   : > { %749 = vmatpush2.msra.mxu0 %v646_v14 }
  0xff   : > { %751 = vmatmul.mubr.f32.vlgmr.msra.gmra.mxu0 %v3981_v3  ;;  %v4010_v3 = vrot.slane %v4005_v21, %v368_v19 }
 0x100   : > { %756 = vmatprep.mubr.f32.mxu0 %v3985_v5  ;;  %v531_v5 = vrot.slane %v4005_v21, %v530_v20 }
 0x103   : > { %757 = vmatmul.mubr.f32.gmra.mxu0 %v3991_v9  ;;  %v3738_v9 = vmov 1934713408  }
 0x104   : > { %v804_v24 = vunpack.c.l.s4 %v3738_v9 }
 0x106   : > { %v805_v32 = vunpack.c.0.s8 %v804_v24 }
 0x108   : > { %v4030_v45 = vsub.s32 %v805_v32, %v4001_v16 }
 0x17b   : > { %v440_v26 = vpop.f32.mrf.mxu0 }
 0x17c   : > { %v602_v28 = vpop.f32.mrf.mxu1  ;;  %v441_v30 = vadd.f32 %v440_v26, %v4010_v3 }
 0x17d   : > { %v603_v31 = vadd.f32 %v602_v28, %v531_v5  ;;  %v442_v33 = vpop.f32.mrf.mxu0 }
 0x17e   : > { %v604_v34 = vpop.f32.mrf.mxu1  ;;  %v763_v35 = vmul.f32 0.088388346, %v441_v30  ;;  %v443_v38 = vadd.f32 %v442_v33, %v4014_v25 }
 0x17f   : > { %v1235_v37 = vcombine.high %v603_v31, %v3739_v36  ;;  %v1242_v39 = vrot.slane %v603_v31, %v4017_v27  ;;  %v605_v40 = vadd.f32 %v604_v34, %v4020_v29  ;;  %v446_v41 = vpop.f32.mrf.mxu0 }
 0x180   : > { %v771_v42 = vcombine.high %v763_v35, %v3739_v36  ;;  %v778_v43 = vrot.slane %v763_v35, %v4017_v27  ;;  %v764_v44 = vmul.f32 0.088388346, %v443_v38  ;;  %v447_v49 = vadd.f32 %v446_v41, %v4010_v3  ;;  %v608_v11 = vpop.f32.mrf.mxu1 }
 0x181   : > { %v1249_v46 = vrot.slane %v1235_v37, %v4017_v27  ;;  %v1250_v47 = vcombine.high %v605_v40, %v3739_v36  ;;  %v1257_v48 = vrot.slane %v605_v40, %v4017_v27  ;;  %v448_v50 = vpop.f32.mrf.mxu0  ;;  %v609_v15 = vadd.f32 %v608_v11, %v531_v5 }
 0x182   : > { %v785_v51 = vrot.slane %v771_v42, %v4017_v27  ;;  %v786_v52 = vcombine.high %v764_v44, %v3739_v36  ;;  %v793_v53 = vrot.slane %v764_v44, %v4017_v27  ;;  %v449_v54 = vadd.f32 %v448_v50, %v4014_v25  ;;  %v610_v33 = vpop.f32.mrf.mxu1 }
 0x183   : > { %v1264_v55 = vrot.slane %v1250_v47, %v4017_v27  ;;  %v1265_v56 = vcombine.low %v1242_v39, %v1257_v48  ;;  %v1266_v57 = vcombine.high %v1242_v39, %v1257_v48  ;;  %v765_v58 = vmul.f32 0.088388346, %v447_v49  ;;  %v452_v4 = vpop.f32.mrf.mxu0 }
 0x184   : > { %v800_v59 = vrot.slane %v786_v52, %v4017_v27  ;;  %v801_v60 = vcombine.low %v778_v43, %v793_v53  ;;  %v802_v61 = vcombine.high %v778_v43, %v793_v53  ;;  %v766_v62 = vmul.f32 0.088388346, %v449_v54 }
 0x185   : > { %v4043_v63 = vrot.slane %v1265_v56, %v4030_v45  ;;  %v4046_v0 = vrot.slane %v1266_v57, %v4030_v45  ;;  %v1281_v1 = vcombine.low %v1249_v46, %v1264_v55  ;;  %v1282_v2 = vcombine.high %v1249_v46, %v1264_v55  ;;  %v454_v26 = vpop.f32.mrf.mxu0 }
 0x186   : > { %v4049_v6 = vrot.slane %v801_v60, %v4030_v45  ;;  %v4052_v7 = vrot.slane %v802_v61, %v4030_v45  ;;  %v817_v8 = vcombine.low %v785_v51, %v800_v59  ;;  %v818_v10 = vcombine.high %v785_v51, %v800_v59 }
 0x187   : > { %v4055_v12 = vrot.slane %v1281_v1, %v4030_v45  ;;  %v4058_v13 = vrot.slane %v1282_v2, %v4030_v45  ;;  %v1367_v14 = vcombine.low %v4043_v63, %v4046_v0  ;;  %v3316_v20 = vcombine.high %v4043_v63, %v4046_v0 }
 0x188   : > { %v4063_v17 = vrot.slane %v817_v8, %v4030_v45  ;;  %v4066_v18 = vrot.slane %v818_v10, %v4030_v45  ;;  %v1035_v19 = vcombine.low %v4049_v6, %v4052_v7  ;;  %v3308_v22 = vcombine.high %v4049_v6, %v4052_v7  ;;  %v458_v10 = vpop.f32.mrf.mxu0 }
 0x189   : > { %v1383_v9 = vcombine.low %v4055_v12, %v4058_v13  ;;  %v3317_v5 = vcombine.high %v4055_v12, %v4058_v13  ;;  %v837_v24 = vcombine.high %v765_v58, %v3739_v36  ;;  %v844_v30 = vrot.slane %v765_v58, %v4017_v27 }
 0x18a   : > { %v1051_v28 = vcombine.low %v4063_v17, %v4066_v18  ;;  %v852_v31 = vcombine.high %v766_v62, %v3739_v36  ;;  %v859_v32 = vrot.slane %v766_v62, %v4017_v27  ;;  %v3309_v34 = vcombine.high %v4063_v17, %v4066_v18 }
 0x18b   : > { %v851_v35 = vrot.slane %v837_v24, %v4017_v27  ;;  %v453_v37 = vadd.f32 %v452_v4, %v4010_v3  ;;  %v1301_v38 = vcombine.high %v609_v15, %v3739_v36  ;;  %v455_v42 = vadd.f32 %v454_v26, %v4014_v25 }
 0x18c   : > { %v866_v39 = vrot.slane %v852_v31, %v4017_v27  ;;  %v867_v40 = vcombine.low %v844_v30, %v859_v32  ;;  %v868_v41 = vcombine.high %v844_v30, %v859_v32  ;;  %v1308_v44 = vrot.slane %v609_v15, %v4017_v27 }
 0x18d   : > { %v767_v43 = vmul.f32 0.088388346, %v453_v37  ;;  %v1315_v46 = vrot.slane %v1301_v38, %v4017_v27  ;;  %v611_v47 = vadd.f32 %v610_v33, %v4020_v29  ;;  %v768_v54 = vmul.f32 0.088388346, %v455_v42 }
 0x18e   : > { %v875_v48 = vrot.slane %v867_v40, %v4030_v45  ;;  %v882_v49 = vrot.slane %v868_v41, %v4030_v45  ;;  %v883_v50 = vcombine.low %v851_v35, %v866_v39  ;;  %v884_v51 = vcombine.high %v851_v35, %v866_v39 }
 0x18f   : > { %v903_v52 = vcombine.high %v767_v43, %v3739_v36  ;;  %v910_v53 = vrot.slane %v767_v43, %v4017_v27  ;;  %v1316_v55 = vcombine.high %v611_v47, %v3739_v36  ;;  %v918_v60 = vcombine.high %v768_v54, %v3739_v36 }
 0x190   : > { %v891_v56 = vrot.slane %v883_v50, %v4030_v45  ;;  %v898_v57 = vrot.slane %v884_v51, %v4030_v45  ;;  %v1085_v58 = vcombine.low %v875_v48, %v882_v49  ;;  %v3310_v59 = vcombine.high %v875_v48, %v882_v49 }
 0x191   : > { %v917_v29 = vrot.slane %v903_v52, %v4017_v27  ;;  %v925_v61 = vrot.slane %v768_v54, %v4017_v27  ;;  %v1323_v62 = vrot.slane %v611_v47, %v4017_v27  ;;  %v932_v11 = vrot.slane %v918_v60, %v4017_v27  ;;  %v460_v47 = vpop.f32.mrf.mxu0 }
 0x192   : > { %v4106_v1 = vrot.slane %v1085_v58, %v4017_v27  ;;  %v4109_v2 = vrot.slane %v3310_v59, %v4017_v27  ;;  %v1101_v4 = vcombine.low %v891_v56, %v898_v57  ;;  %v3311_v8 = vcombine.high %v891_v56, %v898_v57 }
 0x193   : > { %v933_v15 = vcombine.low %v910_v53, %v925_v61  ;;  %v934_v24 = vcombine.high %v910_v53, %v925_v61  ;;  %v1330_v26 = vrot.slane %v1316_v55, %v4017_v27  ;;  %v1331_v32 = vcombine.low %v1308_v44, %v1323_v62 }
 0x194   : > { %v4114_v30 = vrot.slane %v1101_v4, %v4017_v27  ;;  %v4117_v31 = vrot.slane %v3311_v8, %v4017_v27  ;;  %v459_v33 = vadd.f32 %v458_v10, %v4010_v3  ;;  %v949_v38 = vcombine.low %v917_v29, %v932_v11 }
 0x195   : > { %v4121_v35 = vrot.slane %v933_v15, %v4030_v45  ;;  %v4124_v37 = vrot.slane %v934_v24, %v4030_v45  ;;  %v950_v39 = vcombine.high %v917_v29, %v932_v11  ;;  %v1117_v40 = vcombine.low %v4106_v1, %v4109_v2 }
 0x196   : > { %v1332_v41 = vcombine.high %v1308_v44, %v1323_v62  ;;  %v4129_v42 = vrot.slane %v1331_v32, %v4030_v45  ;;  %v1347_v43 = vcombine.low %v1315_v46, %v1330_v26  ;;  %v1125_v3 = vcombine.low %v4114_v30, %v4117_v31 }
 0x197   : > { %v4134_v48 = vrot.slane %v949_v38, %v4030_v45  ;;  %v4137_v49 = vrot.slane %v950_v39, %v4030_v45  ;;  %v1135_v50 = vcombine.low %v4121_v35, %v4124_v37  ;;  %v1348_v44 = vcombine.high %v1315_v46, %v1330_v26 }
 0x198   : > { %v1346_v51 = vrot.slane %v1332_v41, %v4030_v45  ;;  %v4143_v52 = vrot.slane %v1347_v43, %v4030_v45  ;;  %v769_v53 = vmul.f32 0.088388346, %v459_v33  ;;  %v3312_v54 = vcombine.high %v4121_v35, %v4124_v37 }
 0x199   : > { %v1151_v55 = vcombine.low %v4134_v48, %v4137_v49  ;;  %v461_v56 = vadd.f32 %v460_v47, %v4014_v25  ;;  %v1374_v57 = vrot.slane %v1367_v14, %v4017_v27  ;;  %v3313_v46 = vcombine.high %v4134_v48, %v4137_v49 }
 0x19a   : > { %v1362_v58 = vrot.slane %v1348_v44, %v4030_v45  ;;  %v1417_v59 = vcombine.low %v4129_v42, %v1346_v51  ;;  %v969_v29 = vcombine.high %v769_v53, %v3739_v36  ;;  %v976_v60 = vrot.slane %v769_v53, %v4017_v27 }
 0x19b   : > { %v770_v61 = vmul.f32 0.088388346, %v461_v56  ;;  %v1382_v25 = vrot.slane %v3316_v20, %v4017_v27  ;;  %v1390_v14 = vrot.slane %v1383_v9, %v4017_v27  ;;  %v3318_v62 = vcombine.high %v4129_v42, %v1346_v51 }
 0x19c   : > { %v1433_v1 = vcombine.low %v4143_v52, %v1362_v58  ;;  %v983_v2 = vrot.slane %v969_v29, %v4017_v27  ;;  %v1398_v4 = vrot.slane %v3317_v5, %v4017_v27  ;;  %v1042_v20 = vrot.slane %v1035_v19, %v4017_v27 }
 0x19d   : > { %v984_v8 = vcombine.high %v770_v61, %v3739_v36  ;;  %v991_v63 = vrot.slane %v770_v61, %v4017_v27  ;;  %v1399_v0 = vcombine.low %v1374_v57, %v1382_v25  ;;  %v1050_v10 = vrot.slane %v3308_v22, %v4017_v27 }
 0x19e   : > { %v1407_v9 = vcombine.low %v1390_v14, %v1398_v4  ;;  %v1058_v12 = vrot.slane %v1051_v28, %v4017_v27  ;;  %v1066_v13 = vrot.slane %v3309_v34, %v4017_v27  ;;  %v3319_v5 = vcombine.high %v4143_v52, %v1362_v58 }
 0x19f   : > { %v998_v19 = vrot.slane %v984_v8, %v4017_v27  ;;  %v999_v11 = vcombine.low %v976_v60, %v991_v63  ;;  %v1000_v15 = vcombine.high %v976_v60, %v991_v63  ;;  %v1406_v24 = vrot.slane %v1399_v0, %v4030_v45 }
 0x1a0   : > { %v1414_v6 = vrot.slane %v1407_v9, %v4030_v45  ;;  %v1067_v7 = vcombine.low %v1042_v20, %v1050_v10  ;;  %v1075_v22 = vcombine.low %v1058_v12, %v1066_v13  ;;  %v1124_v32 = vrot.slane %v1117_v40, %v4030_v45 }
 0x1a1   : > { %v1007_v26 = vrot.slane %v999_v11, %v4030_v45  ;;  %v1014_v28 = vrot.slane %v1000_v15, %v4030_v45  ;;  %v1015_v30 = vcombine.low %v983_v2, %v998_v19  ;;  %v1016_v31 = vcombine.high %v983_v2, %v998_v19 }
 0x1a2   : > { %v1415_v17 = vcombine.low %v1406_v24, %v1414_v6  ;;  %v1074_v18 = vrot.slane %v1067_v7, %v4030_v45  ;;  %v1082_v34 = vrot.slane %v1075_v22, %v4030_v45  ;;  %v1416_v43 = vcombine.high %v1406_v24, %v1414_v6 }
 0x1a3   : > { %v1023_v33 = vrot.slane %v1015_v30, %v4030_v45  ;;  %v1030_v38 = vrot.slane %v1016_v31, %v4030_v45  ;;  %v1185_v39 = vcombine.low %v1007_v26, %v1014_v28  ;;  %v3314_v41 = vcombine.high %v1007_v26, %v1014_v28 }
 0x1a4   : > { %3376 = vmatprep.subr.mxu0 %v1415_v17  ;;  %v1083_v42 = vcombine.low %v1074_v18, %v1082_v34  ;;  %v1132_v47 = vrot.slane %v1125_v3, %v4030_v45  ;;  %v1424_v51 = vrot.slane %v1417_v59, %v4017_v27  ;;  %v1432_v57 = vrot.slane %v3318_v62, %v4017_v27 }
 0x1a5   : > { %v1192_v44 = vrot.slane %v1185_v39, %v4017_v27  ;;  %v1200_v52 = vrot.slane %v3314_v41, %v4017_v27  ;;  %v1201_v53 = vcombine.low %v1023_v33, %v1030_v38  ;;  %v3315_v56 = vcombine.high %v1023_v33, %v1030_v38  ;;  %3377 = vmatpush3.xpose.msra.mxu0 %v1415_v17 }
 0x1a6   : > { %3378 = vmatprep.mubr.f32.mxu0 %v1083_v42  ;;  %3381 = vmatprep.subr.mxu0 %v1416_v43  ;;  %v1133_v40 = vcombine.low %v1124_v32, %v1132_v47  ;;  %v1440_v58 = vrot.slane %v1433_v1, %v4017_v27  ;;  %v1084_v60 = vcombine.high %v1074_v18, %v1082_v34 }
 0x1a7   : > { %v1208_v29 = vrot.slane %v1201_v53, %v4017_v27  ;;  %v1216_v3 = vrot.slane %v3315_v56, %v4017_v27  ;;  %v1448_v59 = vrot.slane %v3319_v5, %v4017_v27  ;;  %v1449_v61 = vcombine.low %v1424_v51, %v1432_v57 }
 0x1a8   : > { %3379 = vmatmul.mubr.f32.vlgmr.msra.gmra.mxu0 %v1133_v40  ;;  %v1142_v25 = vrot.slane %v1135_v50, %v4017_v27  ;;  %v1150_v14 = vrot.slane %v3312_v54, %v4017_v27  ;;  %v1158_v62 = vrot.slane %v1151_v55, %v4017_v27  ;;  %v1166_v2 = vrot.slane %v3313_v46, %v4017_v27 }
 0x1a9   : > { %3382 = vmatpush3.xpose.msra.mxu0 %v1416_v43  ;;  %3383 = vmatprep.mubr.f32.mxu0 %v1084_v60  ;;  %v1457_v1 = vcombine.low %v1440_v58, %v1448_v59  ;;  %v1217_v4 = vcombine.low %v1192_v44, %v1200_v52  ;;  %v1456_v50 = vrot.slane %v1449_v61, %v4030_v45  ;;  %v680_v5 = vsub.s32 2, %v4001_v16 }
 0x1aa   : > { %v1134_v8 = vcombine.high %v1124_v32, %v1132_v47  ;;  %v1167_v63 = vcombine.low %v1142_v25, %v1150_v14  ;;  %v1225_v35 = vcombine.low %v1208_v29, %v1216_v3  ;;  %v1175_v54 = vcombine.low %v1158_v62, %v1166_v2 }
 0x1ab   : > { %v1464_v37 = vrot.slane %v1457_v1, %v4030_v45  ;;  %v1224_v0 = vrot.slane %v1217_v4, %v4030_v45  ;;  %v681_v19 = vrot.slane %v4005_v21, %v680_v5  ;;  %v685_v11 = vrot.slane %v4007_v23, %v680_v5 }
 0x1ac   : > { %3384 = vmatmul.mubr.f32.vlgmr.msra.gmra.mxu0 %v1134_v8  ;;  %v1174_v55 = vrot.slane %v1167_v63, %v4030_v45  ;;  %v1232_v20 = vrot.slane %v1225_v35, %v4030_v45  ;;  %v1182_v48 = vrot.slane %v1175_v54, %v4030_v45 }
 0x1ad   : > { %v1465_v9 = vcombine.low %v1456_v50, %v1464_v37  ;;  %v1466_v49 = vcombine.high %v1456_v50, %v1464_v37 }
 0x1ae   : > { %v1183_v46 = vcombine.low %v1174_v55, %v1182_v48  ;;  %v1233_v10 = vcombine.low %v1224_v0, %v1232_v20  ;;  %v1184_v12 = vcombine.high %v1174_v55, %v1182_v48  ;;  %v1234_v13 = vcombine.high %v1224_v0, %v1232_v20 }
 0x1af   : > { %3386 = vmatprep.subr.mxu0 %v1465_v9 }
 0x1b0   : > { %3387 = vmatpush3.xpose.msra.mxu0 %v1465_v9  ;;  %3388 = vmatprep.mubr.f32.mxu0 %v1183_v46 }
 0x1b1   : > { %3391 = vmatprep.subr.mxu0 %v1466_v49 }
 0x1b3   : > { %3389 = vmatmul.mubr.f32.vlgmr.msra.gmra.mxu0 %v1233_v10 }
 0x1b4   : > { %3392 = vmatpush3.xpose.msra.mxu0 %v1466_v49  ;;  %3393 = vmatprep.mubr.f32.mxu0 %v1184_v12 }
 0x1b7   : > { %3394 = vmatmul.mubr.f32.vlgmr.msra.gmra.mxu0 %v1234_v13 }
 0x1bf   : > { %v752_v15 = vpop.f32.mrf.mxu0 }
 0x1c0   : > { %v753_v24 = vadd.f32 %v752_v15, %v681_v19 }
 0x1c1   : > { %v754_v6 = vpop.f32.mrf.mxu0 }
 0x1c2   : > { %v1467_v7 = vcombine.high %v753_v24, %v3739_v36  ;;  %v755_v22 = vadd.f32 %v754_v6, %v685_v11  ;;  %v1474_v26 = vrot.slane %v753_v24, %v4017_v27 }
 0x1c3   : > { %v758_v28 = vpop.f32.mrf.mxu0 }
 0x1c4   : > { %v1481_v30 = vrot.slane %v1467_v7, %v4017_v27  ;;  %v1482_v31 = vcombine.high %v755_v22, %v3739_v36  ;;  %v1489_v17 = vrot.slane %v755_v22, %v4017_v27  ;;  %v759_v18 = vadd.f32 %v758_v28, %v681_v19 }
 0x1c5   : > { %v760_v34 = vpop.f32.mrf.mxu0 }
 0x1c6   : > { %v1496_v21 = vrot.slane %v1482_v31, %v4017_v27  ;;  %v1533_v23 = vcombine.high %v759_v18, %v3739_v36  ;;  %v761_v32 = vadd.f32 %v760_v34, %v685_v11  ;;  %v1497_v33 = vcombine.low %v1474_v26, %v1489_v17 }
 0x1c7   : > { %v1498_v38 = vcombine.high %v1474_v26, %v1489_v17  ;;  %v1540_v42 = vrot.slane %v759_v18, %v4017_v27 }
 0x1c8   : > { %v1513_v39 = vcombine.low %v1481_v30, %v1496_v21  ;;  %v1514_v41 = vcombine.high %v1481_v30, %v1496_v21  ;;  %v1547_v43 = vrot.slane %v1533_v23, %v4017_v27  ;;  %v1548_v47 = vcombine.high %v761_v32, %v3739_v36 }
 0x1c9   : > { %v1555_v51 = vrot.slane %v761_v32, %v4017_v27  ;;  %v1505_v52 = vrot.slane %v1497_v33, %v4030_v45  ;;  %v1512_v53 = vrot.slane %v1498_v38, %v4030_v45 }
 0x1ca   : > { %v1562_v44 = vrot.slane %v1548_v47, %v4017_v27  ;;  %v1521_v56 = vrot.slane %v1513_v39, %v4030_v45  ;;  %v1528_v40 = vrot.slane %v1514_v41, %v4030_v45 }
 0x1cb   : > { %v1563_v57 = vcombine.low %v1540_v42, %v1555_v51  ;;  %v1564_v58 = vcombine.high %v1540_v42, %v1555_v51  ;;  %v1599_v60 = vcombine.low %v1505_v52, %v1512_v53  ;;  %v3320_v59 = vcombine.high %v1505_v52, %v1512_v53 }
 0x1cc   : > { %v1579_v29 = vcombine.low %v1547_v43, %v1562_v44  ;;  %v1580_v3 = vcombine.high %v1547_v43, %v1562_v44  ;;  %v1615_v61 = vcombine.low %v1521_v56, %v1528_v40  ;;  %v3321_v25 = vcombine.high %v1521_v56, %v1528_v40 }
 0x1cd   : > { %v1571_v14 = vrot.slane %v1563_v57, %v4030_v45  ;;  %v1578_v62 = vrot.slane %v1564_v58, %v4030_v45  ;;  %v1606_v4 = vrot.slane %v1599_v60, %v4017_v27  ;;  %v1614_v50 = vrot.slane %v3320_v59, %v4017_v27 }
 0x1ce   : > { %v1587_v1 = vrot.slane %v1579_v29, %v4030_v45  ;;  %v1594_v2 = vrot.slane %v1580_v3, %v4030_v45  ;;  %v1622_v8 = vrot.slane %v1615_v61, %v4017_v27  ;;  %v1630_v63 = vrot.slane %v3321_v25, %v4017_v27 }
 0x1cf   : > { %v1649_v35 = vcombine.low %v1571_v14, %v1578_v62  ;;  %v3322_v37 = vcombine.high %v1571_v14, %v1578_v62  ;;  %v1631_v55 = vcombine.low %v1606_v4, %v1614_v50 }
 0x1d0   : > { %v1665_v54 = vcombine.low %v1587_v1, %v1594_v2  ;;  %v3323_v0 = vcombine.high %v1587_v1, %v1594_v2  ;;  %v1639_v20 = vcombine.low %v1622_v8, %v1630_v63 }
 0x1d1   : > { %v1638_v9 = vrot.slane %v1631_v55, %v4030_v45  ;;  %v1656_v49 = vrot.slane %v1649_v35, %v4017_v27  ;;  %v1664_v46 = vrot.slane %v3322_v37, %v4017_v27 }
 0x1d2   : > { %v1646_v48 = vrot.slane %v1639_v20, %v4030_v45  ;;  %v1672_v10 = vrot.slane %v1665_v54, %v4017_v27  ;;  %v1680_v12 = vrot.slane %v3323_v0, %v4017_v27 }
 0x1d3   : > { %v1681_v19 = vcombine.low %v1656_v49, %v1664_v46 }
 0x1d4   : > { %v1647_v13 = vcombine.low %v1638_v9, %v1646_v48  ;;  %v1648_v5 = vcombine.high %v1638_v9, %v1646_v48  ;;  %v1689_v11 = vcombine.low %v1672_v10, %v1680_v12 }
 0x1d5   : > { %v1688_v15 = vrot.slane %v1681_v19, %v4030_v45 }
 0x1d6   : > { %3396 = vmatprep.subr.mxu0 %v1647_v13  ;;  %3401 = vmatprep.subr.mxu1 %v1648_v5  ;;  %v1696_v24 = vrot.slane %v1689_v11, %v4030_v45 }
 0x1d7   : > { %3397 = vmatpush3.msra.mxu0 %v1647_v13  ;;  %3402 = vmatpush3.msra.mxu1 %v1648_v5 }
 0x1d8   : > { %v4270_v6 = vcombine.low %v1688_v15, %v1696_v24  ;;  %v4272_v7 = vcombine.high %v1688_v15, %v1696_v24 }
 0x1da   : > { %3406 = vmatprep.subr.mxu1 %v4270_v6 }
 0x268   : > { %v3380_v22 = vpop.f32.mrf.mxu0 }
 0x269   : > { %v2003_v26 = vsel %vm1999_vm0, %v3380_v22, -inf }
 0x26a   : > { %2004 = vmax.xlane.f32.xlu1 %v2003_v26  ;;  %v1765_v28 = vpop.f32.mrf.mxu0 }
 0x26b   : > { %v2000_v30 = vsel %vm1999_vm0, %v1765_v28, -inf }
 0x26c   : > { %2001 = vmax.xlane.f32.xlu0 %v2000_v30  ;;  %v3385_v31 = vpop.f32.mrf.mxu0 }
 0x26d   : > { %v2009_v17 = vsel %vm1999_vm0, %v3385_v31, -inf }
 0x26e   : > { %2010 = vmax.xlane.f32.xlu1 %v2009_v17  ;;  %v1840_v18 = vpop.f32.mrf.mxu0 }
 0x26f   : > { %v2006_v34 = vsel %vm1999_vm0, %v1840_v18, -inf }
 0x270   : > { %2007 = vmax.xlane.f32.xlu0 %v2006_v34 }
 0x273   : > { %v3390_v21 = vpop.f32.mrf.mxu0 }
 0x274   : > { %v2015_v23 = vsel %vm1999_vm0, %v3390_v21, -inf }
 0x275   : > { %2016 = vmax.xlane.f32.xlu1 %v2015_v23  ;;  %v1915_v32 = vpop.f32.mrf.mxu0 }
 0x276   : > { %v2012_v33 = vsel %vm1999_vm0, %v1915_v32, -inf }
 0x277   : > { %2013 = vmax.xlane.f32.xlu0 %v2012_v33  ;;  %v3395_v38 = vpop.f32.mrf.mxu0 }
 0x278   : > { %v2021_v39 = vsel %vm1999_vm0, %v3395_v38, -inf }
 0x279   : > { %2022 = vmax.xlane.f32.xlu1 %v2021_v39  ;;  %v1990_v41 = vpop.f32.mrf.mxu0 }
 0x27a   : > { %v2018_v42 = vsel %vm1999_vm0, %v1990_v41, -inf }
 0x27b   : > { %2019 = vmax.xlane.f32.xlu0 %v2018_v42 }
 0x2f3   : > { %v2005_v43 = vpop.xlane.xlu1 %2004 }
 0x2f4   : > { %v2025_v47 = vsub.f32 %v3380_v22, %v2005_v43 }
 0x2f5   : > { %v2002_v51 = vpop.xlane.xlu0 %2001 }
 0x2f6   : > { %v2034_v44 = vmul.f32 1.442695, %v2025_v47  ;;  %v2024_v52 = vsub.f32 %v1765_v28, %v2002_v51  ;;  %v2916_v51 = vld [vmem:[#allocation7 + $0x6f8] sm:$0xff] }
 0x2f7   : > { %v2011_v53 = vpop.xlane.xlu1 %2010 }
 0x2f8   : > { %3495 = vpow2.f32 %v2034_v44  ;;  %v2032_v56 = vmul.f32 1.442695, %v2024_v52  ;;  %v2027_v40 = vsub.f32 %v3385_v31, %v2011_v53 }
 0x2f9   : > { %v2008_v57 = vpop.xlane.xlu0 %2007 }
 0x2fa   : > { %3497 = vpow2.f32 %v2032_v56  ;;  %v2026_v58 = vsub.f32 %v1840_v18, %v2008_v57  ;;  %v2038_v29 = vmul.f32 1.442695, %v2027_v40  ;;  %v2915_v40 = vld [vmem:[#allocation7 + $0x6f0] sm:$0xff]  ;;  %v2913_v57 = vld [vmem:[#allocation7 + $0x6e0] sm:$0xff] }
 0x2fc   : > { %v2036_v3 = vmul.f32 1.442695, %v2026_v58  ;;  %v2912_v58 = vld [vmem:[#allocation7 + $0x6d8] sm:$0xff] }
 0x2fe   : > { %3499 = vpow2.f32 %v2036_v3  ;;  %v2017_v60 = vpop.xlane.xlu1 %2016  ;;  %v2910_v3 = vld [vmem:[#allocation7 + $0x6c8] sm:$0xff] }
 0x2ff   : > { %v2029_v59 = vsub.f32 %v3390_v21, %v2017_v60  ;;  %3501 = vpow2.f32 %v2038_v29  ;;  %v2911_v29 = vld [vmem:[#allocation7 + $0x6d0] sm:$0xff]  ;;  %v2909_v60 = vld [vmem:[#allocation7 + $0x6c0] sm:$0xff] }
 0x300   : > { %v2014_v61 = vpop.xlane.xlu0 %2013 }
 0x301   : > { %v2042_v25 = vmul.f32 1.442695, %v2029_v59  ;;  %v2028_v14 = vsub.f32 %v1915_v32, %v2014_v61  ;;  %v2907_v59 = vld [vmem:[#allocation7 + $0x6b0] sm:$0xff]  ;;  %v2906_v61 = vld [vmem:[#allocation7 + $0x6a8] sm:$0xff] }
 0x302   : > { %v2023_v62 = vpop.xlane.xlu1 %2022 }
 0x303   : > { %v2040_v1 = vmul.f32 1.442695, %v2028_v14  ;;  %v2031_v2 = vsub.f32 %v3395_v38, %v2023_v62  ;;  %3503 = vpow2.f32 %v2042_v25  ;;  %v2905_v25 = vld [vmem:[#allocation7 + $0x6a0] sm:$0xff]  ;;  %v2904_v14 = vld [vmem:[#allocation7 + $0x698] sm:$0xff]  ;;  %v2903_v62 = vld [vmem:[#allocation7 + $0x690] sm:$0xff] }
 0x304   : > { %v2020_v4 = vpop.xlane.xlu0 %2019 }
 0x305   : > { %v3496_v50 = vpop.eup %3495  ;;  %3505 = vpow2.f32 %v2040_v1  ;;  %v2046_v8 = vmul.f32 1.442695, %v2031_v2  ;;  %v2030_v63 = vsub.f32 %v1990_v41, %v2020_v4  ;;  %v2902_v1 = vld [vmem:[#allocation7 + $0x688] sm:$0xff]  ;;  %v2901_v2 = vld [vmem:[#allocation7 + $0x680] sm:$0xff]  ;;  %v2900_v4 = vld [vmem:[#allocation7 + $0x678] sm:$0xff] }
 0x306   : > { %v2051_v35 = vsel %vm1999_vm0, %v3496_v50, 0.0 }
 0x307   : > { %v3498_v37 = vpop.eup %3497  ;;  %v2044_v54 = vmul.f32 1.442695, %v2030_v63  ;;  %2052 = vadd.xlane.f32.xlu0 %v2051_v35  ;;  %3507 = vpow2.f32 %v2046_v8  ;;  %v2898_v8 = vld [vmem:[#allocation7 + $0x668] sm:$0xff]  ;;  %v2897_v63 = vld [vmem:[#allocation7 + $0x660] sm:$0xff]  ;;  %v2896_v35 = vld [vmem:[#allocation7 + $0x658] sm:$0xff] }
 0x308   : > { %v2048_v0 = vsel %vm1999_vm0, %v3498_v37, 0.0 }
 0x309   : > { %3509 = vpow2.f32 %v2044_v54  ;;  %v2894_v54 = vld [vmem:[#allocation7 + $0x648] sm:$0xff] }
 0x30b   : > { %v3500_v55 = vpop.eup %3499  ;;  %2049 = vadd.xlane.f32.xlu0 %v2048_v0  ;;  %v2893_v0 = vld [vmem:[#allocation7 + $0x640] sm:$0xff] }
 0x30c   : > { %v2054_v20 = vsel %vm1999_vm0, %v3500_v55, 0.0  ;;  %v3502_v9 = vpop.eup %3501 }
 0x30d   : > { %2055 = vadd.xlane.f32.xlu1 %v2054_v20  ;;  %v2057_v48 = vsel %vm1999_vm0, %v3502_v9, 0.0  ;;  %v2891_v20 = vld [vmem:[#allocation7 + $0x630] sm:$0xff] }
 0x310   : > { %v3504_v49 = vpop.eup %3503 }
 0x311   : > { %2058 = vadd.xlane.f32.xlu1 %v2057_v48  ;;  %v2063_v12 = vsel %vm1999_vm0, %v3504_v49, 0.0  ;;  %v2889_v48 = vld [vmem:[#allocation7 + $0x620] sm:$0xff] }
 0x312   : > { %v3506_v46 = vpop.eup %3505 }
 0x313   : > { %v2060_v10 = vsel %vm1999_vm0, %v3506_v46, 0.0 }
 0x314   : > { %2061 = vadd.xlane.f32.xlu0 %v2060_v10  ;;  %v3508_v13 = vpop.eup %3507  ;;  %v2886_v10 = vld [vmem:[#allocation7 + $0x608] sm:$0xff] }
 0x315   : > { %2064 = vadd.xlane.f32.xlu1 %v2063_v12  ;;  %v2069_v11 = vsel %vm1999_vm0, %v3508_v13, 0.0  ;;  %v2885_v12 = vld [vmem:[#allocation7 + $0x600] sm:$0xff] }
 0x316   : > { %v3510_v5 = vpop.eup %3509 }
 0x317   : > { %v2066_v19 = vsel %vm1999_vm0, %v3510_v5, 0.0 }
 0x318   : > { %2067 = vadd.xlane.f32.xlu0 %v2066_v19  ;;  %v2946_v19 = vld [vmem:[#allocation7 + $0x7e8] sm:$0xff] }
 0x319   : > { %2070 = vadd.xlane.f32.xlu1 %v2069_v11  ;;  %v2945_v11 = vld [vmem:[#allocation7 + $0x7e0] sm:$0xff] }
 0x390   : > { %v2053_v15 = vpop.xlane.xlu0 %2052 }
 0x391   : > { %3511 = vrcp.f32 %v2053_v15  ;;  %v2944_v15 = vld [vmem:[#allocation7 + $0x7d8] sm:$0xff] }
 0x394   : > { %v2050_v24 = vpop.xlane.xlu0 %2049 }
 0x395   : > { %3513 = vrcp.f32 %v2050_v24  ;;  %v2943_v24 = vld [vmem:[#allocation7 + $0x7d0] sm:$0xff] }
 0x396   : > { %v2056_v22 = vpop.xlane.xlu1 %2055 }
 0x397   : > { %3515 = vrcp.f32 %v2056_v22  ;;  %v2942_v22 = vld [vmem:[#allocation7 + $0x7c8] sm:$0xff] }
 0x39a   : > { %v2059_v26 = vpop.xlane.xlu1 %2058 }
 0x39b   : > { %3517 = vrcp.f32 %v2059_v26  ;;  %v2941_v26 = vld [vmem:[#allocation7 + $0x7c0] sm:$0xff] }
 0x39d   : > { %v2062_v28 = vpop.xlane.xlu0 %2061 }
 0x39e   : > { %3519 = vrcp.f32 %v2062_v28  ;;  %v2065_v30 = vpop.xlane.xlu1 %2064  ;;  %v3512_v31 = vpop.eup %3511  ;;  %v2940_v28 = vld [vmem:[#allocation7 + $0x7b8] sm:$0xff] }
 0x39f   : > { %3521 = vrcp.f32 %v2065_v30  ;;  %v2089_v32 = vmul.f32 %v3512_v31, %v3496_v50  ;;  %v2899_v50 = vld [vmem:[#allocation7 + $0x670] sm:$0xff]  ;;  %v2938_v31 = vld [vmem:[#allocation7 + $0x7a8] sm:$0xff] }
 0x3a0   : > { %v2939_v30 = vld [vmem:[#allocation7 + $0x7b0] sm:$0xff] }
 0x3a1   : > { %v2068_v17 = vpop.xlane.xlu0 %2067 }
 0x3a2   : > { %v3514_v18 = vpop.eup %3513  ;;  %3523 = vrcp.f32 %v2068_v17  ;;  %v2071_v34 = vpop.xlane.xlu1 %2070  ;;  %v2937_v17 = vld [vmem:[#allocation7 + $0x7a0] sm:$0xff] }
 0x3a3   : > { %3525 = vrcp.f32 %v2071_v34  ;;  %v2088_v21 = vmul.f32 %v3514_v18, %v3498_v37  ;;  %v2895_v37 = vld [vmem:[#allocation7 + $0x650] sm:$0xff]  ;;  %v2936_v18 = vld [vmem:[#allocation7 + $0x798] sm:$0xff] }
 0x3a4   : > { %v3516_v23 = vpop.eup %3515  ;;  %v2935_v34 = vld [vmem:[#allocation7 + $0x790] sm:$0xff] }
 0x3a5   : > { %3398 = vmatprep.mubr.msk.f32.mxu0 %vm1999_vm0, %v2088_v21  ;;  %v2090_v33 = vmul.f32 %v3516_v23, %v3500_v55  ;;  %v2892_v55 = vld [vmem:[#allocation7 + $0x638] sm:$0xff]  ;;  %v2934_v21 = vld [vmem:[#allocation7 + $0x788] sm:$0xff]  ;;  %v2933_v23 = vld [vmem:[#allocation7 + $0x780] sm:$0xff] }
 0x3a6   : > { %3399 = vmatmul.mubr.msk.f32.vlgmr.msra.gmra.mxu0 %vm1999_vm0, %v2089_v32  ;;  %v2932_v32 = vld [vmem:[#allocation7 + $0x778] sm:$0xff] }
 0x3a7   : > { %3403 = vmatprep.mubr.msk.f32.mxu1 %vm1999_vm0, %v2090_v33  ;;  %v2931_v33 = vld [vmem:[#allocation7 + $0x770] sm:$0xff] }
 0x3a8   : > { %v3518_v38 = vpop.eup %3517 }
 0x3a9   : > { %v2091_v39 = vmul.f32 %v3518_v38, %v3502_v9  ;;  %v2890_v9 = vld [vmem:[#allocation7 + $0x628] sm:$0xff] }
 0x3aa   : > { %v2930_v38 = vld [vmem:[#allocation7 + $0x768] sm:$0xff] }
 0x3ab   : > { %v3520_v41 = vpop.eup %3519  ;;  %3404 = vmatmul.mubr.msk.f32.vlgmr.msra.gmra.mxu1 %vm1999_vm0, %v2091_v39  ;;  %v2929_v39 = vld [vmem:[#allocation7 + $0x760] sm:$0xff] }
 0x3ac   : > { %v3522_v42 = vpop.eup %3521  ;;  %3407 = vmatpush3.msra.mxu1 %v4270_v6  ;;  %v2092_v43 = vmul.f32 %v3520_v41, %v3506_v46  ;;  %v2914_v6 = vld [vmem:[#allocation7 + $0x6e8] sm:$0xff]  ;;  %v2887_v46 = vld [vmem:[#allocation7 + $0x610] sm:$0xff]  ;;  %v2928_v41 = vld [vmem:[#allocation7 + $0x758] sm:$0xff] }
 0x3ad   : > { %3411 = vmatprep.subr.mxu1 %v4272_v7  ;;  %v2093_v47 = vmul.f32 %v3522_v42, %v3504_v49  ;;  %v2888_v49 = vld [vmem:[#allocation7 + $0x618] sm:$0xff]  ;;  %v2927_v42 = vld [vmem:[#allocation7 + $0x750] sm:$0xff] }
 0x3ae   : > { %3408 = vmatprep.mubr.msk.f32.mxu1 %vm1999_vm0, %v2092_v43  ;;  %v2926_v43 = vld [vmem:[#allocation7 + $0x748] sm:$0xff] }
 0x3af   : > { %v3524_v44 = vpop.eup %3523  ;;  %3409 = vmatmul.mubr.msk.f32.vlgmr.msra.gmra.mxu1 %vm1999_vm0, %v2093_v47  ;;  %v2925_v47 = vld [vmem:[#allocation7 + $0x740] sm:$0xff] }
 0x3b0   : > { %v3526_v52 = vpop.eup %3525  ;;  %3412 = vmatpush3.msra.mxu1 %v4272_v7  ;;  %v2094_v53 = vmul.f32 %v3524_v44, %v3510_v5  ;;  %v2908_v7 = vld [vmem:[#allocation7 + $0x6b8] sm:$0xff]  ;;  %v2947_v5 = vld [vmem:[#allocation7 + $0x7f0] sm:$0xff] }
 0x3b1   : > { %v2095_v56 = vmul.f32 %v3526_v52, %v3508_v13  ;;  %2957 = vmatprep.subr.mxu1 %v2916_v51  ;;  %v2948_v13 = vld [vmem:[#allocation7 + $0x7f8] sm:$0xff]  ;;  %v2923_v44 = vld [vmem:[#allocation7 + $0x730] sm:$0xff]  ;;  %v2922_v52 = vld [vmem:[#allocation7 + $0x728] sm:$0xff] }
 0x3b2   : > { %3413 = vmatprep.mubr.msk.f32.mxu1 %vm1999_vm0, %v2094_v53  ;;  %v2924_v51 = vld [vmem:[#allocation7 + $0x738] sm:$0xff]  ;;  %v2921_v53 = vld [vmem:[#allocation7 + $0x720] sm:$0xff] }
 0x3b3   : > { %3414 = vmatmul.mubr.msk.f32.vlgmr.msra.gmra.mxu1 %vm1999_vm0, %v2095_v56  ;;  %v2920_v56 = vld [vmem:[#allocation7 + $0x718] sm:$0xff] }
 0x3b4   : > { %2958 = vmatpush1.msra.mxu1 %v2915_v40  ;;  %v2919_v40 = vld [vmem:[#allocation7 + $0x710] sm:$0xff] }
 0x3b5   : > { %2959 = vmatprep.subr.mxu1 %v2914_v6  ;;  %v2918_v6 = vld [vmem:[#allocation7 + $0x708] sm:$0xff] }
 0x3b6   : > { %2960 = vmatpush1.msra.mxu1 %v2913_v57  ;;  %v2917_v57 = vld [vmem:[#allocation7 + $0x700] sm:$0xff] }
 0x3b7   : > { %2961 = vmatprep.subr.mxu1 %v2912_v58 }
 0x3b8   : > { %2962 = vmatpush1.msra.mxu1 %v2911_v29 }
 0x3b9   : > { %2963 = vmatprep.subr.mxu1 %v2910_v3 }
 0x3ba   : > { %2964 = vmatpush1.msra.mxu1 %v2909_v60 }
 0x3bb   : > { %2965 = vmatprep.subr.mxu1 %v2908_v7 }
 0x3bc   : > { %2966 = vmatpush1.msra.mxu1 %v2907_v59 }
 0x3bd   : > { %2967 = vmatprep.subr.mxu1 %v2906_v61 }
 0x3be   : > { %2968 = vmatpush1.msra.mxu1 %v2905_v25 }
 0x3bf   : > { %2969 = vmatprep.subr.mxu1 %v2904_v14 }
 0x3c0   : > { %2970 = vmatpush1.msra.mxu1 %v2903_v62 }
 0x3c1   : > { %2971 = vmatprep.subr.mxu1 %v2902_v1 }
 0x3c2   : > { %2972 = vmatpush1.msra.mxu1 %v2901_v2 }
 0x3c3   : > { %2973 = vmatprep.subr.mxu1 %v2900_v4 }
 0x3c4   : > { %2974 = vmatpush1.msra.mxu1 %v2899_v50 }
 0x3c5   : > { %2975 = vmatprep.subr.mxu1 %v2898_v8 }
 0x3c6   : > { %2976 = vmatpush1.msra.mxu1 %v2897_v63 }
 0x3c7   : > { %2977 = vmatprep.subr.mxu1 %v2896_v35 }
 0x3c8   : > { %2978 = vmatpush1.msra.mxu1 %v2895_v37 }
 0x3c9   : > { %2979 = vmatprep.subr.mxu1 %v2894_v54 }
 0x3ca   : > { %2980 = vmatpush1.msra.mxu1 %v2893_v0 }
 0x3cb   : > { %2981 = vmatprep.subr.mxu1 %v2892_v55 }
 0x3cc   : > { %2982 = vmatpush1.msra.mxu1 %v2891_v20 }
 0x3cd   : > { %2983 = vmatprep.subr.mxu1 %v2890_v9 }
 0x3ce   : > { %2984 = vmatpush1.msra.mxu1 %v2889_v48 }
 0x3cf   : > { %2985 = vmatprep.subr.mxu1 %v2888_v49 }
 0x3d0   : > { %2986 = vmatpush1.msra.mxu1 %v2887_v46 }
 0x3d1   : > { %2987 = vmatprep.subr.mxu1 %v2886_v10 }
 0x3d2   : > { %2988 = vmatpush1.msra.mxu1 %v2885_v12 }
 0x3d3   : > { %2989 = vmatprep.subr.mxu1 %v2948_v13 }
 0x3d4   : > { %2990 = vmatpush2.msra.mxu1 %v2947_v5 }
 0x3d5   : > { %2991 = vmatprep.subr.mxu1 %v2946_v19 }
 0x3d6   : > { %2992 = vmatpush2.msra.mxu1 %v2945_v11 }
 0x3d7   : > { %2993 = vmatprep.subr.mxu1 %v2944_v15 }
 0x3d8   : > { %2994 = vmatpush2.msra.mxu1 %v2943_v24 }
 0x3d9   : > { %2995 = vmatprep.subr.mxu1 %v2942_v22 }
 0x3da   : > { %2996 = vmatpush2.msra.mxu1 %v2941_v26 }
 0x3db   : > { %2997 = vmatprep.subr.mxu1 %v2940_v28 }
 0x3dc   : > { %2998 = vmatpush2.msra.mxu1 %v2939_v30 }
 0x3dd   : > { %2999 = vmatprep.subr.mxu1 %v2938_v31 }
 0x3de   : > { %3000 = vmatpush2.msra.mxu1 %v2937_v17 }
 0x3df   : > { %3001 = vmatprep.subr.mxu1 %v2936_v18 }
 0x3e0   : > { %3002 = vmatpush2.msra.mxu1 %v2935_v34 }
 0x3e1   : > { %3003 = vmatprep.subr.mxu1 %v2934_v21 }
 0x3e2   : > { %3004 = vmatpush2.msra.mxu1 %v2933_v23 }
 0x3e3   : > { %3005 = vmatprep.subr.mxu1 %v2932_v32 }
 0x3e4   : > { %3006 = vmatpush2.msra.mxu1 %v2931_v33 }
 0x3e5   : > { %3007 = vmatprep.subr.mxu1 %v2930_v38 }
 0x3e6   : > { %3008 = vmatpush2.msra.mxu1 %v2929_v39 }
 0x3e7   : > { %3009 = vmatprep.subr.mxu1 %v2928_v41 }
 0x3e8   : > { %3010 = vmatpush2.msra.mxu1 %v2927_v42 }
 0x3e9   : > { %3011 = vmatprep.subr.mxu1 %v2926_v43 }
 0x3ea   : > { %3012 = vmatpush2.msra.mxu1 %v2925_v47 }
 0x3eb   : > { %3013 = vmatprep.subr.mxu1 %v2924_v51 }
 0x3ec   : > { %3014 = vmatpush2.msra.mxu1 %v2923_v44 }
 0x3ed   : > { %3015 = vmatprep.subr.mxu1 %v2922_v52 }
 0x3ee   : > { %3016 = vmatpush2.msra.mxu1 %v2921_v53 }
 0x3ef   : > { %3017 = vmatprep.subr.mxu1 %v2920_v56 }
 0x3f0   : > { %3018 = vmatpush2.msra.mxu1 %v2919_v40 }
 0x3f1   : > { %3019 = vmatprep.subr.mxu1 %v2918_v6 }
 0x3f2   : > { %3020 = vmatpush2.msra.mxu1 %v2917_v57 }
 0x466   : > { %v3400_v58 = vpop.f32.mrf.mxu0 }
 0x467   : > { %v2486_v3 = vcombine.high %v3400_v58, %v3739_v36  ;;  %v2493_v59 = vrot.slane %v3400_v58, %v4017_v27 }
 0x468   : > { %v2168_v29 = vpop.f32.mrf.mxu0 }
 0x469   : > { %v2420_v60 = vcombine.high %v2168_v29, %v3739_v36  ;;  %v2500_v14 = vrot.slane %v2486_v3, %v4017_v27  ;;  %v2427_v8 = vrot.slane %v2168_v29, %v4017_v27 }
 0x46b   : > { %v3405_v7 = vpop.f32.mrf.mxu1  ;;  %v2434_v63 = vrot.slane %v2420_v60, %v4017_v27 }
 0x46c   : > { %v2501_v61 = vcombine.high %v3405_v7, %v3739_v36  ;;  %v2508_v25 = vrot.slane %v3405_v7, %v4017_v27 }
 0x46d   : > { %v2249_v62 = vpop.f32.mrf.mxu1 }
 0x46e   : > { %v2515_v1 = vrot.slane %v2501_v61, %v4017_v27  ;;  %v2516_v2 = vcombine.low %v2493_v59, %v2508_v25  ;;  %v2517_v4 = vcombine.high %v2493_v59, %v2508_v25  ;;  %v2435_v50 = vcombine.high %v2249_v62, %v3739_v36 }
 0x46f   : > { %v2442_v35 = vrot.slane %v2249_v62, %v4017_v27  ;;  %v3410_v37 = vpop.f32.mrf.mxu1 }
 0x470   : > { %v2524_v54 = vrot.slane %v2516_v2, %v4030_v45  ;;  %v2531_v0 = vrot.slane %v2517_v4, %v4030_v45  ;;  %v2532_v55 = vcombine.low %v2500_v14, %v2515_v1  ;;  %v2533_v20 = vcombine.high %v2500_v14, %v2515_v1 }
 0x471   : > { %v2449_v9 = vrot.slane %v2435_v50, %v4017_v27  ;;  %v2450_v48 = vcombine.low %v2427_v8, %v2442_v35  ;;  %v2451_v49 = vcombine.high %v2427_v8, %v2442_v35  ;;  %v2618_v46 = vcombine.high %v3410_v37, %v3739_v36  ;;  %v2330_v10 = vpop.f32.mrf.mxu1 }
 0x472   : > { %v4318_v12 = vrot.slane %v2532_v55, %v4030_v45  ;;  %v4321_v13 = vrot.slane %v2533_v20, %v4030_v45  ;;  %v2734_v5 = vcombine.low %v2524_v54, %v2531_v0  ;;  %v3334_v19 = vcombine.high %v2524_v54, %v2531_v0 }
 0x473   : > { %v2458_v11 = vrot.slane %v2450_v48, %v4030_v45  ;;  %v2465_v15 = vrot.slane %v2451_v49, %v4030_v45  ;;  %v2466_v24 = vcombine.low %v2434_v63, %v2449_v9  ;;  %v2467_v22 = vcombine.high %v2434_v63, %v2449_v9  ;;  %v3415_v26 = vpop.f32.mrf.mxu1 }
 0x474   : > { %v4326_v28 = vrot.slane %v2734_v5, %v4017_v27  ;;  %v4329_v30 = vrot.slane %v3334_v19, %v4017_v27  ;;  %v2750_v31 = vcombine.low %v4318_v12, %v4321_v13  ;;  %v3335_v32 = vcombine.high %v4318_v12, %v4321_v13 }
 0x475   : > { %v2474_v17 = vrot.slane %v2466_v24, %v4030_v45  ;;  %v2481_v18 = vrot.slane %v2467_v22, %v4030_v45  ;;  %v2684_v34 = vcombine.low %v2458_v11, %v2465_v15  ;;  %v3332_v21 = vcombine.high %v2458_v11, %v2465_v15  ;;  %v2411_v23 = vpop.f32.mrf.mxu1 }
 0x476   : > { %v2625_v33 = vrot.slane %v3410_v37, %v4017_v27  ;;  %v2632_v38 = vrot.slane %v2618_v46, %v4017_v27  ;;  %v2552_v39 = vcombine.high %v2330_v10, %v3739_v36  ;;  %v2559_v51 = vrot.slane %v2330_v10, %v4017_v27 }
 0x477   : > { %v2691_v41 = vrot.slane %v2684_v34, %v4017_v27  ;;  %v2699_v42 = vrot.slane %v3332_v21, %v4017_v27  ;;  %v2700_v43 = vcombine.low %v2474_v17, %v2481_v18  ;;  %v3333_v47 = vcombine.high %v2474_v17, %v2481_v18 }
 0x478   : > { %v2633_v44 = vcombine.high %v3415_v26, %v3739_v36  ;;  %v2640_v52 = vrot.slane %v3415_v26, %v4017_v27  ;;  %v2567_v53 = vcombine.high %v2411_v23, %v3739_v36  ;;  %v2574_v56 = vrot.slane %v2411_v23, %v4017_v27 }
 0x479   : > { %v2707_v40 = vrot.slane %v2700_v43, %v4017_v27  ;;  %v2715_v6 = vrot.slane %v3333_v47, %v4017_v27  ;;  %v2716_v57 = vcombine.low %v2691_v41, %v2699_v42  ;;  %v2566_v7 = vrot.slane %v2552_v39, %v4017_v27 }
 0x47a   : > { %v2647_v58 = vrot.slane %v2633_v44, %v4017_v27  ;;  %v2648_v29 = vcombine.low %v2625_v33, %v2640_v52  ;;  %v2649_v3 = vcombine.high %v2625_v33, %v2640_v52  ;;  %v2581_v60 = vrot.slane %v2567_v53, %v4017_v27 }
 0x47b   : > { %v2582_v59 = vcombine.low %v2559_v51, %v2574_v56  ;;  %v2583_v61 = vcombine.high %v2559_v51, %v2574_v56  ;;  %v2723_v25 = vrot.slane %v2716_v57, %v4030_v45  ;;  %v2724_v54 = vcombine.low %v2707_v40, %v2715_v6  ;;  %v4381_v57 = vld [vmem:[#allocation8] sm:$0xff] }
 0x47c   : > { %v2656_v36 = vrot.slane %v2648_v29, %v4030_v45  ;;  %v2663_v14 = vrot.slane %v2649_v3, %v4030_v45  ;;  %v2664_v62 = vcombine.low %v2632_v38, %v2647_v58  ;;  %v2665_v1 = vcombine.high %v2632_v38, %v2647_v58  ;;  %v4384_v29 = vld [vmem:[#allocation8 + $0x8] sm:$0xff] }
 0x47d   : > { %v2590_v2 = vrot.slane %v2582_v59, %v4030_v45  ;;  %v2597_v4 = vrot.slane %v2583_v61, %v4030_v45  ;;  %v2598_v50 = vcombine.low %v2566_v7, %v2581_v60  ;;  %v2599_v8 = vcombine.high %v2566_v7, %v2581_v60 }
 0x47e   : > { %v2672_v63 = vrot.slane %v2664_v62, %v4030_v45  ;;  %v2679_v35 = vrot.slane %v2665_v1, %v4030_v45  ;;  %v2834_v37 = vcombine.low %v2656_v36, %v2663_v14  ;;  %v3338_v49 = vcombine.high %v2656_v36, %v2663_v14  ;;  %v3538_v14 = vld [vmem:[%s3955_s8 + $0x8] sm:$0xff] }
 0x47f   : > { %v2606_v0 = vrot.slane %v2598_v50, %v4030_v45  ;;  %v2613_v55 = vrot.slane %v2599_v8, %v4030_v45  ;;  %v2784_v20 = vcombine.low %v2590_v2, %v2597_v4  ;;  %v3336_v9 = vcombine.high %v2590_v2, %v2597_v4 }
 0x480   : > { %v2841_v48 = vrot.slane %v2834_v37, %v4017_v27  ;;  %v2850_v46 = vcombine.low %v2672_v63, %v2679_v35  ;;  %v3339_v10 = vcombine.high %v2672_v63, %v2679_v35  ;;  %v2731_v11 = vrot.slane %v2724_v54, %v4030_v45  ;;  %v3539_v63 = vld [vmem:[%s3955_s8 + $0x10] sm:$0xff]  ;;  %v3540_v37 = vld [vmem:[%s3955_s8 + $0x18] sm:$0xff] }
 0x481   : > { %v2791_v12 = vrot.slane %v2784_v20, %v4017_v27  ;;  %v2799_v13 = vrot.slane %v3336_v9, %v4017_v27  ;;  %v2800_v5 = vcombine.low %v2606_v0, %v2613_v55  ;;  %v3337_v19 = vcombine.high %v2606_v0, %v2613_v55 }
 0x482   : > { %v2757_v15 = vrot.slane %v2750_v31, %v4017_v27  ;;  %v2765_v24 = vrot.slane %v3335_v32, %v4017_v27  ;;  %v2766_v22 = vcombine.low %v4326_v28, %v4329_v30  ;;  %v2857_v34 = vrot.slane %v2850_v46, %v4017_v27 }
 0x483   : > { %v2807_v26 = vrot.slane %v2800_v5, %v4017_v27  ;;  %v2815_v17 = vrot.slane %v3337_v19, %v4017_v27  ;;  %v2816_v18 = vcombine.low %v2791_v12, %v2799_v13  ;;  %v2849_v21 = vrot.slane %v3338_v49, %v4017_v27  ;;  %v3541_v49 = vld [vmem:[%s3955_s8 + $0x20] sm:$0xff] }
 0x484   : > { %v2733_v23 = vcombine.high %v2723_v25, %v2731_v11  ;;  %v2732_v33 = vcombine.low %v2723_v25, %v2731_v11  ;;  %v2774_v38 = vcombine.low %v2757_v15, %v2765_v24  ;;  %v2865_v31 = vrot.slane %v3339_v10, %v4017_v27  ;;  %v3537_v25 = vld [vmem:[%s3955_s8] sm:$0xff]  ;;  %v3542_v10 = vld [vmem:[%s3955_s8 + $0x28] sm:$0xff]  ;;  %v3543_v15 = vld [vmem:[%s3955_s8 + $0x30] sm:$0xff] }
 0x485   : > { %v2824_v39 = vcombine.low %v2807_v26, %v2815_v17  ;;  %v2773_v32 = vrot.slane %v2766_v22, %v4030_v45  ;;  %v2823_v30 = vrot.slane %v2816_v18, %v4030_v45  ;;  %v2866_v47 = vcombine.low %v2841_v48, %v2849_v21  ;;  %v3544_v22 = vld [vmem:[%s3955_s8 + $0x38] sm:$0xff] }
 0x486   : > { %3021 = vmatprep.mubr.f32.mxu1 %v2733_v23  ;;  %v2781_v28 = vrot.slane %v2774_v38, %v4030_v45  ;;  %v2874_v42 = vcombine.low %v2857_v34, %v2865_v31  ;;  %v2951_v6 = vsub.s32 3, %v4001_v16 }
 0x487   : > { %3022 = vmatmul.mubr.f32.vlgmr.msra.gmra.mxu1 %v2732_v33  ;;  %v2831_v41 = vrot.slane %v2824_v39, %v4030_v45  ;;  %v2873_v53 = vrot.slane %v2866_v47, %v4030_v45 }
 0x488   : > { %v2783_v43 = vcombine.high %v2773_v32, %v2781_v28  ;;  %v2782_v51 = vcombine.low %v2773_v32, %v2781_v28  ;;  %v2881_v52 = vrot.slane %v2874_v42, %v4030_v45  ;;  %v2952_v58 = vrot.slane %v4381_v57, %v2951_v6 }
 0x489   : > { %v2833_v44 = vcombine.high %v2823_v30, %v2831_v41  ;;  %v2832_v27 = vcombine.low %v2823_v30, %v2831_v41  ;;  %v2956_v3 = vrot.slane %v4384_v29, %v2951_v6 }
 0x48a   : > { %3027 = vmatprep.mubr.f32.mxu1 %v2783_v43  ;;  %v2883_v56 = vcombine.high %v2873_v53, %v2881_v52  ;;  %v2882_v40 = vcombine.low %v2873_v53, %v2881_v52 }
 0x48b   : > { %3028 = vmatmul.mubr.f32.gmra.mxu1 %v2782_v51 }
 0x48c   : > { %3033 = vmatprep.mubr.f32.mxu1 %v2833_v44 }
 0x48f   : > { %3034 = vmatmul.mubr.f32.gmra.mxu1 %v2832_v27 }
 0x490   : > { %3039 = vmatprep.mubr.f32.mxu1 %v2883_v56 }
 0x493   : > { %3040 = vmatmul.mubr.f32.gmra.mxu1 %v2882_v40 }
 0x547   : > { %v3023_v60 = vpop.f32.mrf.mxu1 }
 0x548   : > { %v3024_v45 = vadd.f32 %v3023_v60, %v2952_v58 }
 0x549   : > { %v3025_v7 = vpop.f32.mrf.mxu1 }
 0x54a   : > { %v3026_v59 = vadd.f32 %v3025_v7, %v2956_v3  ;;  %v3046_v36 = vadd.f32 %v3537_v25, %v3024_v45 }
 0x54b   : > { %v3029_v61 = vpop.f32.mrf.mxu1 }
 0x54c   : > { %v3047_v62 = vadd.f32 %v3538_v14, %v3026_v59  ;;  %v3030_v1 = vadd.f32 %v3029_v61, %v2952_v58 }
 0x54d   : > { %v3031_v2 = vpop.f32.mrf.mxu1 }
 0x54e   : > { %v3032_v4 = vadd.f32 %v3031_v2, %v2956_v3  ;;  %v3054_v50 = vadd.f32 %v3047_v62, %v3046_v36  ;;  %v3048_v35 = vadd.f32 %v3539_v63, %v3030_v1 }
 0x54f   : > { %v3035_v8 = vpop.f32.mrf.mxu1 }
 0x550   : > { %v3049_v54 = vadd.f32 %v3540_v37, %v3032_v4  ;;  %v3036_v0 = vadd.f32 %v3035_v8, %v2952_v58  ;;  %3055 = vadd.xlane.f32.xlu0 %v3054_v50  ;;  %v3121_v8 = vsub.s32 4, %v4001_v16 }
 0x551   : > { %v3037_v55 = vpop.f32.mrf.mxu1 }
 0x552   : > { %v3038_v20 = vadd.f32 %v3037_v55, %v2956_v3  ;;  %v3057_v9 = vadd.f32 %v3049_v54, %v3048_v35  ;;  %v3050_v46 = vadd.f32 %v3541_v49, %v3036_v0  ;;  %v3126_v0 = vrot.slane %v4384_v29, %v3121_v8 }
 0x553   : > { %v3041_v48 = vpop.f32.mrf.mxu1 }
 0x554   : > { %v3051_v12 = vadd.f32 %v3542_v10, %v3038_v20  ;;  %v3042_v13 = vadd.f32 %v3041_v48, %v2952_v58  ;;  %3058 = vadd.xlane.f32.xlu1 %v3057_v9 }
 0x555   : > { %v3043_v5 = vpop.f32.mrf.mxu1 }
 0x556   : > { %v3044_v19 = vadd.f32 %v3043_v5, %v2956_v3  ;;  %v3060_v11 = vadd.f32 %v3051_v12, %v3050_v46  ;;  %v3052_v24 = vadd.f32 %v3543_v15, %v3042_v13 }
 0x558   : > { %v3053_v26 = vadd.f32 %v3544_v22, %v3044_v19  ;;  %3061 = vadd.xlane.f32.xlu0 %v3060_v11 }
 0x55a   : > { %v3063_v17 = vadd.f32 %v3053_v26, %v3052_v24 }
 0x55c   : > { %3064 = vadd.xlane.f32.xlu1 %v3063_v17 }
 0x5d9   : > { %v3056_v18 = vpop.xlane.xlu0 %3055 }
 0x5da   : > { %v3067_v34 = vmul.f32 0.00390625, %v3056_v18 }
 0x5dc   : > { %v3071_v21 = vsub.f32 %v3046_v36, %v3067_v34  ;;  %v3072_v23 = vsub.f32 %v3047_v62, %v3067_v34 }
 0x5dd   : > { %v3059_v33 = vpop.xlane.xlu1 %3058 }
 0x5de   : > { %v3068_v38 = vmul.f32 0.00390625, %v3059_v33  ;;  %v3079_v39 = vmul.f32 %v3071_v21, %v3071_v21  ;;  %v3080_v31 = vmul.f32 %v3072_v23, %v3072_v23 }
 0x5e0   : > { %v3073_v32 = vsub.f32 %v3048_v35, %v3068_v38  ;;  %v3074_v28 = vsub.f32 %v3049_v54, %v3068_v38  ;;  %v3087_v30 = vadd.f32 %v3080_v31, %v3079_v39  ;;  %v3137_v35 = vsub.s32 5, %v4001_v16 }
 0x5e1   : > { %v3062_v41 = vpop.xlane.xlu0 %3061  ;;  %v3122_v54 = vrot.slane %v4381_v57, %v3121_v8 }
 0x5e2   : > { %v3069_v42 = vmul.f32 0.00390625, %v3062_v41  ;;  %3088 = vadd.xlane.f32.xlu0 %v3087_v30  ;;  %v3081_v43 = vmul.f32 %v3073_v32, %v3073_v32  ;;  %v3082_v47 = vmul.f32 %v3074_v28, %v3074_v28  ;;  %v3138_v20 = vrot.slane %v4381_v57, %v3137_v35 }
 0x5e3   : > { %v3142_v9 = vrot.slane %v4384_v29, %v3137_v35 }
 0x5e4   : > { %v3075_v51 = vsub.f32 %v3050_v46, %v3069_v42  ;;  %v3076_v44 = vsub.f32 %v3051_v12, %v3069_v42  ;;  %v3090_v52 = vadd.f32 %v3082_v47, %v3081_v43 }
 0x5e5   : > { %v3065_v27 = vpop.xlane.xlu1 %3064 }
 0x5e6   : > { %v3070_v53 = vmul.f32 0.00390625, %v3065_v27  ;;  %3091 = vadd.xlane.f32.xlu1 %v3090_v52  ;;  %v3083_v56 = vmul.f32 %v3075_v51, %v3075_v51  ;;  %v3084_v40 = vmul.f32 %v3076_v44, %v3076_v44 }
 0x5e8   : > { %v3077_v6 = vsub.f32 %v3052_v24, %v3070_v53  ;;  %v3078_v58 = vsub.f32 %v3053_v26, %v3070_v53  ;;  %v3093_v3 = vadd.f32 %v3084_v40, %v3083_v56 }
 0x5ea   : > { %3094 = vadd.xlane.f32.xlu0 %v3093_v3  ;;  %v3085_v60 = vmul.f32 %v3077_v6, %v3077_v6  ;;  %v3086_v45 = vmul.f32 %v3078_v58, %v3078_v58 }
 0x5ec   : > { %v3096_v7 = vadd.f32 %v3086_v45, %v3085_v60 }
 0x5ee   : > { %3097 = vadd.xlane.f32.xlu1 %v3096_v7 }
 0x66b   : > { %v3089_v59 = vpop.xlane.xlu0 %3088 }
 0x66c   : > { %v3099_v61 = vmul.f32 0.00390625, %v3089_v59 }
 0x66e   : > { %v3103_v25 = vadd.f32 1e-05, %v3099_v61 }
 0x66f   : > { %v3092_v36 = vpop.xlane.xlu1 %3091 }
 0x670   : > { %3527 = vrsqrt.f32 %v3103_v25  ;;  %v3100_v14 = vmul.f32 0.00390625, %v3092_v36 }
 0x672   : > { %v3104_v62 = vadd.f32 1e-05, %v3100_v14 }
 0x673   : > { %v3095_v1 = vpop.xlane.xlu0 %3094 }
 0x674   : > { %3529 = vrsqrt.f32 %v3104_v62  ;;  %v3101_v2 = vmul.f32 0.00390625, %v3095_v1 }
 0x676   : > { %v3105_v4 = vadd.f32 1e-05, %v3101_v2 }
 0x677   : > { %v3098_v50 = vpop.xlane.xlu1 %3097 }
 0x678   : > { %3531 = vrsqrt.f32 %v3105_v4  ;;  %v3102_v63 = vmul.f32 0.00390625, %v3098_v50 }
 0x67a   : > { %v3106_v37 = vadd.f32 1e-05, %v3102_v63 }
 0x67c   : > { %3533 = vrsqrt.f32 %v3106_v37 }
 0x67d   : > { %v3528_v55 = vpop.eup %3527 }
 0x67e   : > { %v3111_v48 = vmul.f32 %v3528_v55, %v3071_v21  ;;  %v3112_v49 = vmul.f32 %v3528_v55, %v3072_v23 }
 0x680   : > { %v3127_v46 = vmul.f32 %v3122_v54, %v3111_v48  ;;  %v3128_v10 = vmul.f32 %v3126_v0, %v3112_v49 }
 0x681   : > { %v3530_v12 = vpop.eup %3529 }
 0x682   : > { %v3143_v13 = vadd.f32 %v3138_v20, %v3127_v46  ;;  %v3144_v5 = vadd.f32 %v3142_v9, %v3128_v10  ;;  %v3113_v16 = vmul.f32 %v3530_v12, %v3073_v32  ;;  %v3114_v19 = vmul.f32 %v3530_v12, %v3074_v28 }
 0x684   : > { %3151 = vst [vmem:[%s284_s21] sm:$0xff] %v3143_v13  ;;  %3152 = vst [vmem:[%s284_s21 + $0x8] sm:$0xff] %v3144_v5  ;;  %v3129_v11 = vmul.f32 %v3122_v54, %v3113_v16  ;;  %v3130_v15 = vmul.f32 %v3126_v0, %v3114_v19 }
 0x685   : > { %v3532_v24 = vpop.eup %3531 }
 0x686   : > { %v3145_v57 = vadd.f32 %v3138_v20, %v3129_v11  ;;  %v3146_v22 = vadd.f32 %v3142_v9, %v3130_v15  ;;  %v3115_v29 = vmul.f32 %v3532_v24, %v3075_v51  ;;  %v3116_v26 = vmul.f32 %v3532_v24, %v3076_v44 }
 0x688   : > { %3153 = vst [vmem:[%s284_s21 + $0x10] sm:$0xff] %v3145_v57  ;;  %3154 = vst [vmem:[%s284_s21 + $0x18] sm:$0xff] %v3146_v22  ;;  %v3131_v17 = vmul.f32 %v3122_v54, %v3115_v29  ;;  %v3132_v18 = vmul.f32 %v3126_v0, %v3116_v26 }
 0x689   : > { %v3534_v34 = vpop.eup %3533 }
 0x68a   : > { %v3147_v21 = vadd.f32 %v3138_v20, %v3131_v17  ;;  %v3148_v23 = vadd.f32 %v3142_v9, %v3132_v18  ;;  %v3117_v33 = vmul.f32 %v3534_v34, %v3077_v6  ;;  %v3118_v38 = vmul.f32 %v3534_v34, %v3078_v58 }
 0x68c   : > { %3155 = vst [vmem:[%s284_s21 + $0x20] sm:$0xff] %v3147_v21  ;;  %3156 = vst [vmem:[%s284_s21 + $0x28] sm:$0xff] %v3148_v23  ;;  %v3133_v39 = vmul.f32 %v3122_v54, %v3117_v33  ;;  %v3134_v31 = vmul.f32 %v3126_v0, %v3118_v38 }
 0x68e   : > { %v3149_v32 = vadd.f32 %v3138_v20, %v3133_v39  ;;  %v3150_v28 = vadd.f32 %v3142_v9, %v3134_v31 }
 0x690   : > { %3157 = vst [vmem:[%s284_s21 + $0x30] sm:$0xff] %v3149_v32  ;;  %3158 = vst [vmem:[%s284_s21 + $0x38] sm:$0xff] %v3150_v28 }
 0x691   : > { %3666 = shalt.err (!%p3663_p4)
}
 0x692   : > { %s3667_s6 = scalar_lea.hbm %s4407_s24, 1024  ;;  %s3671_s8 = scalar_lea.hbm %s4456_s4, 2048 }
 0x693   : > { %p3668_p5 = scmp.ne.s32.totalorder %s4407_s24, %s3667_s6  ;;  %p3672_p2 = scmp.lt.s32.totalorder %s4407_s24, %s4456_s4 }
 0x694   : > { %p3673_p6 = scmp.lt.s32.totalorder %s3671_s8, %s3667_s6 }
 0x695   : > { %p3669_p7 = pnand %p3668_p5, %p4477_p10 }
 0x696   : > { %p3674_p12 = por %p3673_p6, %p3672_p2 }
 0x697   : > { %p3670_p8 = pneg %p3669_p7 }
 0x699   : > { %p3675_p0 = pnand %p3674_p12, %p3670_p8 }
 0x69b   : > { %3678 = shalt.err (!%p3675_p0)
}
 0x69c   : > { %s3741_s30 = smov 256   ;;  %s3742_s5 = smov 16  }
 0x69d   : > { %3428 = dma.vmem_to_hbm [thread:$0]  (%p4477_p10), %s4409_s25, 1024, %s4407_s24, %s3160_s19, %s3741_s30, %s3741_s30, %s3742_s5  }
 0x69e PF: > { %s3189_s21 = sand.u32 1, %s3717_s15   ;;  %p4478_p3 = scmp.ne.s32.totalorder %s4463_s22, 0 }
 0x69f   : > { %p4479_p11 = scmp.ge.s32.totalorder %s3729_s18, 2  ;;  %s3190_s10 = scalar_lea.sflag [#allocation4], %s3189_s21 }
 0x6a1   : > { %p3445_p9 = pnand %p4479_p11, %p4478_p3 }
 0x6a3   : > { %p3446_p13 = pneg %p3445_p9 }
 0x6a5   : > { %3712 = dma.done.wait (%p3446_p13), %s3190_s10, 1024  }
 0x6a6   : > { %3714 = vsyncadd (%p3446_p13), %s3190_s10, 4294966272  ;;  %p21_p1 = scmp.ge.s32.totalorder %s3843_s11, 4   ;;  %s4480_s15 = smov %s3721_s16 }
 0x6a7   : > { %s4481_s16 = smov %s3725_s17  ;;  %s4482_s17 = smov %s3859_s20 }
 0x6a8   : > { %s4483_s18 = smov %s3843_s11  ;;  %23 = sbr.rel (!%p21_p1) target bundleno = 11 (0xb), region = 105 }
 0x6ad   :  { %3195 = vsyncpa [#allocation3], 1 }
 0x6ae   :  { %3197 = vsyncpa [#allocation3 + $0x1], 1 }
 0x6af   :  { %3198 = vsyncpa [#allocation6], 1 }
 0x6b0   :  { %3200 = vsyncpa [#allocation6 + $0x1], 1 }
 0x6b1   :  { %3201 = vsyncpa [#allocation9], 1 }
 0x6b2   :  { %3202 = vsyncpa [#allocation4], 1 }
 0x6b3   :  { %3204 = vsyncpa [#allocation4 + $0x1], 1 }

</bundles_post_ra>
